<compile_context>
chip_gen: v6e
topology: v6e:2x2x1
jax: 0.10.0
libtpu: 0.0.40
codegen_flags: <defaults>
</compile_context>

<pallas_src>
import functools

import jax
import jax.numpy as jnp
from jax import lax
from jax.experimental import pallas as pl
from jax.experimental.pallas import tpu as pltpu


def _round_up(x, m):
    return ((x + m - 1) // m) * m


_TAPS = tuple((dr, dc) for dr in (-1, 0, 1) for dc in (-1, 0, 1))  # kh-major


def _fused_odefunc_kernel(t_ref, x_ref, w1_ref, b1_ref, w2_ref, b2_ref, o_ref,
                          xpad1_ref, xpad2_ref, im1_ref, im2_ref,
                          *, N, W, HW, P, Cin, hid, cpad1, cpad2):
    """relu(conv2(t, relu(conv1(t, x)))) for the whole (lane-folded) batch.

    t_ref : (1,) f32 SMEM                       scalar t
    x_ref : (N, Cin, HW) f32                    input, channel-major flat NCHW
    wK_ref: (Co, 9*cpadK) bf16                  K index = tap*cpadK + chan
                                                (x/h channels first, t channel
                                                 at index Ci-1, zero pad rows)
    bK_ref: (Co, 1) f32
    o_ref : (N, Cin, HW) f32                    flat NCHW output
    xpadK_ref: (cpadK, N*(HW+2P)) f32 VMEM      per-image zero-padded slabs
    imK_ref  : (9*cpadK, N*HW) bf16  VMEM       im2col staging for the matmul
    """
    f32 = jnp.float32
    bf16 = jnp.bfloat16
    SEG = HW + 2 * P
    t_val = t_ref[0]

    # Column-edge validity masks in flat-lane space, shape (1, HW).
    col = lax.broadcasted_iota(jnp.int32, (1, HW), 1) % W
    mask_l = (col >= 1).astype(f32)        # taps reading column j-1 (dc = -1)
    mask_r = (col <= W - 2).astype(f32)    # taps reading column j+1 (dc = +1)

    # One-time pad/halo init.  The grid has a single step, so this runs once
    # per call (NOT gated on program_id -> safe under any core sharding).
    # The activation/t data regions are fully overwritten below.
    xpad1_ref[...] = jnp.zeros_like(xpad1_ref)
    xpad2_ref[...] = jnp.zeros_like(xpad2_ref)

    def stage_image(xpad_ref, n, act_cm, c_act):
        # Activations at rows [0, c_act) (sublane-aligned start), t at row
        # c_act; lane offset (n*SEG + P) is a multiple of 128 -> aligned store.
        base = n * SEG + P
        xpad_ref[0:c_act, base:base + HW] = act_cm
        xpad_ref[c_act:c_act + 1, base:base + HW] = jnp.full((1, HW), t_val, f32)

    def im2col(xpad_ref, im_ref, cpad):
        # 9 lane-shifted copies per image; column-edge masks folded in at
        # store time.  Store offsets (tap*cpad, n*HW) are (16, 128)-aligned,
        # so the bf16 stores need no relayout.  Row-edge zeros come from the
        # halo strips; pad rows of xpad are zero, so the im2col pad rows (and
        # their zero weight rows) contribute nothing.
        for n in range(N):
            base = n * SEG + P
            for tap, (dr, dc) in enumerate(_TAPS):
                s = base + dr * W + dc
                src = xpad_ref[:, s:s + HW]          # (cpad, HW) f32
                if dc == -1:
                    src = src * mask_l
                elif dc == 1:
                    src = src * mask_r
                im_ref[tap * cpad:(tap + 1) * cpad,
                       n * HW:(n + 1) * HW] = src.astype(bf16)

    def matmul_bias_relu(im_ref, w_ref, b_ref):
        # Single MXU matmul per layer: bf16 x bf16 -> f32 accumulate.
        y = jnp.dot(w_ref[...], im_ref[...], preferred_element_type=f32)
        return jnp.maximum(y + b_ref[...], 0.0)       # (Co, N*HW) f32

    # ---- layer 1: h = relu(conv1(cat[x, t])) --------------------------------
    for n in range(N):
        stage_image(xpad1_ref, n, x_ref[n], Cin)
    im2col(xpad1_ref, im1_ref, cpad1)
    h = matmul_bias_relu(im1_ref, w1_ref, b1_ref)     # (hid, N*HW) f32

    # ---- layer 2: y = relu(conv2(cat[h, t])) --------------------------------
    for n in range(N):
        stage_image(xpad2_ref, n, h[:, n * HW:(n + 1) * HW], hid)
    im2col(xpad2_ref, im2_ref, cpad2)
    y = matmul_bias_relu(im2_ref, w2_ref, b2_ref)     # (Cin, N*HW) f32

    for n in range(N):
        o_ref[n] = y[:, n * HW:(n + 1) * HW].astype(o_ref.dtype)


def pack_odefunc_params(params):
    """One-time repack of ODEfunc params into the kernel's MXU layout.

    Call once per solve (outside the per-step path): the transposes / pads /
    bf16 casts here would otherwise re-run as separate XLA ops on every ODE
    function evaluation.
    """
    def pack_w(w9):
        taps, ci, co = w9.shape                  # (9, C_in+1, C_out), chan 0 = t
        cpad = _round_up(ci, 16)                 # bf16 sublane tile alignment
        perm = list(range(1, ci)) + [0]          # x/h channels first, t last
        w = w9[:, perm, :]
        w = jnp.pad(w, ((0, 0), (0, cpad - ci), (0, 0)))   # zero K rows (free on MXU)
        w = jnp.transpose(w, (2, 0, 1)).reshape(co, taps * cpad)
        return w.astype(jnp.bfloat16)

    return {
        "w1": pack_w(params["w1"]),
        "b1": params["b1"].reshape(-1, 1).astype(jnp.float32),
        "w2": pack_w(params["w2"]),
        "b2": params["b2"].reshape(-1, 1).astype(jnp.float32),
    }


@jax.jit
def odefunc_abstract_forward(t, x_nchw, packed):
    """Pallas implementation of ODEfunc_abstract.forward(t, x) with act='relu'."""
    N, Cin, H, W = x_nchw.shape
    HW = H * W
    hid, k1 = packed["w1"].shape
    Cout, k2 = packed["w2"].shape
    cpad1, cpad2 = k1 // 9, k2 // 9
    assert Cout == Cin and Cin + 1 <= cpad1 and hid + 1 <= cpad2
    assert HW % 128 == 0, "flat spatial size must be lane-aligned"
    P = _round_up(W + 1, 128)                    # halo pad; keeps data stores aligned
    SEG = HW + 2 * P

    x_flat = x_nchw.reshape(N, Cin, HW).astype(jnp.float32)   # free reshape of NCHW
    t_smem = jnp.asarray(t, jnp.float32).reshape(1)

    kernel = functools.partial(_fused_odefunc_kernel, N=N, W=W, HW=HW, P=P,
                               Cin=Cin, hid=hid, cpad1=cpad1, cpad2=cpad2)

    # VMEM footprint ~0.5 MiB at this size; no vmem_limit_bytes override needed.
    out_flat = pl.pallas_call(
        kernel,
        out_shape=jax.ShapeDtypeStruct((N, Cin, HW), jnp.float32),
        grid_spec=pltpu.PrefetchScalarGridSpec(
            num_scalar_prefetch=0,
            grid=(1,),                           # batch folded into the lane dim
            in_specs=[
                pl.BlockSpec(memory_space=pltpu.MemorySpace.SMEM),   # t scalar
                pl.BlockSpec((N, Cin, HW), lambda i: (0, 0, 0)),     # x
                pl.BlockSpec((hid, 9 * cpad1), lambda i: (0, 0)),    # w1
                pl.BlockSpec((hid, 1), lambda i: (0, 0)),            # b1
                pl.BlockSpec((Cin, 9 * cpad2), lambda i: (0, 0)),    # w2
                pl.BlockSpec((Cin, 1), lambda i: (0, 0)),            # b2
            ],
            out_specs=pl.BlockSpec((N, Cin, HW), lambda i: (0, 0, 0)),
            scratch_shapes=[
                pltpu.VMEM((cpad1, N * SEG), jnp.float32),
                pltpu.VMEM((cpad2, N * SEG), jnp.float32),
                pltpu.VMEM((9 * cpad1, N * HW), jnp.bfloat16),
                pltpu.VMEM((9 * cpad2, N * HW), jnp.bfloat16),
            ],
        ),
        compiler_params=pltpu.CompilerParams(
            dimension_semantics=("arbitrary",)),
    )(t_smem, x_flat, packed["w1"], packed["b1"], packed["w2"], packed["b2"])

    return out_flat.reshape(N, Cin, H, W)
    # TODO(synk): nfe counter / store_activations bookkeeping is Python-side
    # mutable state in the torch module and is not part of the numeric forward.


def init_odefunc_params(key, in_dim, hid_dim):
    """Deterministic synthetic parameters (shapes match ODEfunc_abstract).

    Weights kept in (9, Cin+1, Cout) flattened-HWIO layout with the t-channel
    at input-channel index 0 (matching torch.cat([ones*t, x], 1)).
    """
    k1, k2, k3, k4 = jax.random.split(key, 4)
    w1 = jax.random.normal(k1, (9, in_dim + 1, hid_dim), jnp.float32) * 0.1
    b1 = jax.random.normal(k2, (hid_dim,), jnp.float32) * 0.1
    w2 = jax.random.normal(k3, (9, hid_dim + 1, in_dim), jnp.float32) * 0.1
    b2 = jax.random.normal(k4, (in_dim,), jnp.float32) * 0.1
    return {"w1": w1, "b1": b1, "w2": w2, "b2": b2}


# ---------------------- pure-JAX reference for verification ----------------------
def _ref_concat_conv_relu(t, x_nhwc, w9, b):
    N, H, W, Cin = x_nhwc.shape
    t_chan = jnp.ones((N, H, W, 1), x_nhwc.dtype) * jnp.asarray(t, jnp.float32)
    xin = jnp.concatenate([t_chan, x_nhwc], axis=-1)
    w_hwio = w9.reshape(3, 3, Cin + 1, -1)
    y = lax.conv_general_dilated(
        xin, w_hwio, window_strides=(1, 1), padding=((1, 1), (1, 1)),
        dimension_numbers=("NHWC", "HWIO", "NHWC"))
    return jnp.maximum(y + b, 0.0)


def _ref_forward(t, x_nchw, params):
    x = jnp.transpose(x_nchw, (0, 2, 3, 1))
    h = _ref_concat_conv_relu(t, x, params["w1"], params["b1"])
    y = _ref_concat_conv_relu(t, h, params["w2"], params["b2"])
    return jnp.transpose(y, (0, 3, 1, 2))


if __name__ == "__main__":
    key = jax.random.PRNGKey(0)
    kx, kp = jax.random.split(key)

    N, C_in, H, W = 2, 4, 16, 16
    hid_dim = 8
    t = jnp.float32(0.5)

    x = jax.random.normal(kx, (N, C_in, H, W), jnp.float32)
    params = init_odefunc_params(kp, C_in, hid_dim)
    packed = pack_odefunc_params(params)      # once per solve, not per step

    out = odefunc_abstract_forward(t, x, packed)
    out = jax.block_until_ready(out)

    ref = _ref_forward(t, x, params)
    assert out.shape == (N, C_in, H, W)
    max_diff = float(jnp.max(jnp.abs(out - ref)))
    # bf16 MXU inputs (weights + im2col) with f32 accumulation -> relaxed tol.
    assert jnp.allclose(out, ref, rtol=3e-2, atol=3e-2), (
        f"max abs diff: {max_diff}")

    print("KERNEL_OK")
</pallas_src>

<mosaic_0001>
module attributes {stable_mosaic.version = 11 : i64} {
  func.func @_fused_odefunc_kernel(%arg0: i32, %arg1: memref<1xf32, #tpu.memory_space<smem>>, %arg2: memref<2x4x256xf32, #tpu.memory_space<vmem>>, %arg3: memref<8x144xbf16, #tpu.memory_space<vmem>>, %arg4: memref<8x1xf32, #tpu.memory_space<vmem>>, %arg5: memref<4x144xbf16, #tpu.memory_space<vmem>>, %arg6: memref<4x1xf32, #tpu.memory_space<vmem>>, %arg7: memref<2x4x256xf32, #tpu.memory_space<vmem>>, %arg8: memref<16x1024xf32, #tpu.memory_space<vmem>>, %arg9: memref<16x1024xf32, #tpu.memory_space<vmem>>, %arg10: memref<144x512xbf16, #tpu.memory_space<vmem>>, %arg11: memref<144x512xbf16, #tpu.memory_space<vmem>>) attributes {dimension_semantics = [#tpu.dimension_semantics<arbitrary>], iteration_bounds = array<i64: 1>, scalar_prefetch = 0 : i64, scratch_operands = 4 : i64, tpu.core_type = #tpu.core_type<tc>, window_params = [{transform_indices = @transform_0, window_bounds = array<i64: 1>}, {pipeline_mode = #tpu.pipeline_mode<synchronous>, transform_indices = @transform_1, window_bounds = array<i64: 2, 4, 256>}, {pipeline_mode = #tpu.pipeline_mode<synchronous>, transform_indices = @transform_2, window_bounds = array<i64: 8, 144>}, {pipeline_mode = #tpu.pipeline_mode<synchronous>, transform_indices = @transform_3, window_bounds = array<i64: 8, 1>}, {pipeline_mode = #tpu.pipeline_mode<synchronous>, transform_indices = @transform_4, window_bounds = array<i64: 4, 144>}, {pipeline_mode = #tpu.pipeline_mode<synchronous>, transform_indices = @transform_5, window_bounds = array<i64: 4, 1>}, {pipeline_mode = #tpu.pipeline_mode<synchronous>, transform_indices = @transform_6, window_bounds = array<i64: 2, 4, 256>}]} {
    %c0 = arith.constant 0 : index
    %0 = memref.load %arg1[%c0] : memref<1xf32, #tpu.memory_space<smem>>
    %1 = tpu.iota {dimensions = array<i32: 1>} : vector<1x256xi32>
    %c16_i32 = arith.constant 16 : i32
    %c0_i32 = arith.constant 0 : i32
    %2 = arith.cmpi eq, %c16_i32, %c0_i32 : i32
    %c1_i32 = arith.constant 1 : i32
    %3 = arith.select %2, %c1_i32, %c16_i32 : i32
    %4 = vector.broadcast %3 : i32 to vector<1x256xi32>
    %5 = arith.remsi %1, %4 : vector<1x256xi32>
    %c0_i32_0 = arith.constant 0 : i32
    %6 = vector.broadcast %c0_i32_0 : i32 to vector<1x256xi32>
    %7 = arith.cmpi ne, %5, %6 : vector<1x256xi32>
    %c0_i32_1 = arith.constant 0 : i32
    %8 = vector.broadcast %c0_i32_1 : i32 to vector<1x256xi32>
    %9 = arith.cmpi slt, %5, %8 : vector<1x256xi32>
    %c0_i32_2 = arith.constant 0 : i32
    %10 = arith.cmpi slt, %3, %c0_i32_2 : i32
    %11 = vector.broadcast %10 : i1 to vector<1x256xi1>
    %12 = vector.broadcast %11 : vector<1x256xi1> to vector<1x256xi1>
    %13 = arith.xori %9, %12 : vector<1x256xi1>
    %14 = arith.andi %13, %7 : vector<1x256xi1>
    %15 = vector.broadcast %3 : i32 to vector<1x256xi32>
    %16 = arith.addi %5, %15 : vector<1x256xi32>
    %17 = arith.select %14, %16, %5 : vector<1x256xi1>, vector<1x256xi32>
    %c1_i32_3 = arith.constant 1 : i32
    %18 = vector.broadcast %c1_i32_3 : i32 to vector<1x256xi32>
    %19 = arith.cmpi sge, %17, %18 : vector<1x256xi32>
    %20 = arith.extui %19 : vector<1x256xi1> to vector<1x256xi32>
    %21 = arith.sitofp %20 : vector<1x256xi32> to vector<1x256xf32>
    %c14_i32 = arith.constant 14 : i32
    %22 = vector.broadcast %c14_i32 : i32 to vector<1x256xi32>
    %23 = arith.cmpi sle, %17, %22 : vector<1x256xi32>
    %24 = arith.extui %23 : vector<1x256xi1> to vector<1x256xi32>
    %25 = arith.sitofp %24 : vector<1x256xi32> to vector<1x256xf32>
    %cst = arith.constant 0.000000e+00 : f32
    %26 = vector.broadcast %cst : f32 to vector<16x1024xf32>
    %c0_4 = arith.constant 0 : index
    %c0_5 = arith.constant 0 : index
    %27 = vector.load %arg8[%c0_4, %c0_5] : memref<16x1024xf32, #tpu.memory_space<vmem>>, vector<16x1024xf32>
    tpu.vector_store %arg8[%c0_4, %c0_5], %26 {strides = array<i32>} : memref<16x1024xf32, #tpu.memory_space<vmem>>, vector<16x1024xf32>,
    %cst_6 = arith.constant 0.000000e+00 : f32
    %28 = vector.broadcast %cst_6 : f32 to vector<16x1024xf32>
    %c0_7 = arith.constant 0 : index
    %c0_8 = arith.constant 0 : index
    %29 = vector.load %arg9[%c0_7, %c0_8] : memref<16x1024xf32, #tpu.memory_space<vmem>>, vector<16x1024xf32>
    tpu.vector_store %arg9[%c0_7, %c0_8], %28 {strides = array<i32>} : memref<16x1024xf32, #tpu.memory_space<vmem>>, vector<16x1024xf32>,
    %c0_9 = arith.constant 0 : index
    %c0_10 = arith.constant 0 : index
    %c0_11 = arith.constant 0 : index
    %30 = vector.load %arg2[%c0_9, %c0_10, %c0_11] : memref<2x4x256xf32, #tpu.memory_space<vmem>>, vector<1x4x256xf32>
    %31 = vector.shape_cast %30 : vector<1x4x256xf32> to vector<4x256xf32>
    %c0_12 = arith.constant 0 : index
    %c128 = arith.constant 128 : index
    %32 = vector.load %arg8[%c0_12, %c128] : memref<16x1024xf32, #tpu.memory_space<vmem>>, vector<4x256xf32>
    tpu.vector_store %arg8[%c0_12, %c128], %31 {strides = array<i32>} : memref<16x1024xf32, #tpu.memory_space<vmem>>, vector<4x256xf32>,
    %33 = vector.broadcast %0 : f32 to vector<1x256xf32>
    %c4 = arith.constant 4 : index
    %c128_13 = arith.constant 128 : index
    %34 = vector.load %arg8[%c4, %c128_13] : memref<16x1024xf32, #tpu.memory_space<vmem>>, vector<1x256xf32>
    tpu.vector_store %arg8[%c4, %c128_13], %33 {strides = array<i32>} : memref<16x1024xf32, #tpu.memory_space<vmem>>, vector<1x256xf32>,
    %c1 = arith.constant 1 : index
    %c0_14 = arith.constant 0 : index
    %c0_15 = arith.constant 0 : index
    %35 = vector.load %arg2[%c1, %c0_14, %c0_15] : memref<2x4x256xf32, #tpu.memory_space<vmem>>, vector<1x4x256xf32>
    %36 = vector.shape_cast %35 : vector<1x4x256xf32> to vector<4x256xf32>
    %c0_16 = arith.constant 0 : index
    %c640 = arith.constant 640 : index
    %37 = vector.load %arg8[%c0_16, %c640] : memref<16x1024xf32, #tpu.memory_space<vmem>>, vector<4x256xf32>
    tpu.vector_store %arg8[%c0_16, %c640], %36 {strides = array<i32>} : memref<16x1024xf32, #tpu.memory_space<vmem>>, vector<4x256xf32>,
    %38 = vector.broadcast %0 : f32 to vector<1x256xf32>
    %c4_17 = arith.constant 4 : index
    %c640_18 = arith.constant 640 : index
    %39 = vector.load %arg8[%c4_17, %c640_18] : memref<16x1024xf32, #tpu.memory_space<vmem>>, vector<1x256xf32>
    tpu.vector_store %arg8[%c4_17, %c640_18], %38 {strides = array<i32>} : memref<16x1024xf32, #tpu.memory_space<vmem>>, vector<1x256xf32>,
    %c0_19 = arith.constant 0 : index
    %c111 = arith.constant 111 : index
    %40 = vector.load %arg8[%c0_19, %c111] : memref<16x1024xf32, #tpu.memory_space<vmem>>, vector<16x256xf32>
    %41 = vector.broadcast %21 : vector<1x256xf32> to vector<16x256xf32>
    %42 = arith.mulf %40, %41 : vector<16x256xf32>
    %43 = arith.truncf %42 : vector<16x256xf32> to vector<16x256xbf16>
    %c0_20 = arith.constant 0 : index
    %c0_21 = arith.constant 0 : index
    %44 = vector.load %arg10[%c0_20, %c0_21] : memref<144x512xbf16, #tpu.memory_space<vmem>>, vector<16x256xbf16>
    tpu.vector_store %arg10[%c0_20, %c0_21], %43 {strides = array<i32>} : memref<144x512xbf16, #tpu.memory_space<vmem>>, vector<16x256xbf16>,
    %c0_22 = arith.constant 0 : index
    %c112 = arith.constant 112 : index
    %45 = vector.load %arg8[%c0_22, %c112] : memref<16x1024xf32, #tpu.memory_space<vmem>>, vector<16x256xf32>
    %46 = arith.truncf %45 : vector<16x256xf32> to vector<16x256xbf16>
    %c16 = arith.constant 16 : index
    %c0_23 = arith.constant 0 : index
    %47 = vector.load %arg10[%c16, %c0_23] : memref<144x512xbf16, #tpu.memory_space<vmem>>, vector<16x256xbf16>
    tpu.vector_store %arg10[%c16, %c0_23], %46 {strides = array<i32>} : memref<144x512xbf16, #tpu.memory_space<vmem>>, vector<16x256xbf16>,
    %c0_24 = arith.constant 0 : index
    %c113 = arith.constant 113 : index
    %48 = vector.load %arg8[%c0_24, %c113] : memref<16x1024xf32, #tpu.memory_space<vmem>>, vector<16x256xf32>
    %49 = vector.broadcast %25 : vector<1x256xf32> to vector<16x256xf32>
    %50 = arith.mulf %48, %49 : vector<16x256xf32>
    %51 = arith.truncf %50 : vector<16x256xf32> to vector<16x256xbf16>
    %c32 = arith.constant 32 : index
    %c0_25 = arith.constant 0 : index
    %52 = vector.load %arg10[%c32, %c0_25] : memref<144x512xbf16, #tpu.memory_space<vmem>>, vector<16x256xbf16>
    tpu.vector_store %arg10[%c32, %c0_25], %51 {strides = array<i32>} : memref<144x512xbf16, #tpu.memory_space<vmem>>, vector<16x256xbf16>,
    %c0_26 = arith.constant 0 : index
    %c127 = arith.constant 127 : index
    %53 = vector.load %arg8[%c0_26, %c127] : memref<16x1024xf32, #tpu.memory_space<vmem>>, vector<16x256xf32>
    %54 = vector.broadcast %21 : vector<1x256xf32> to vector<16x256xf32>
    %55 = arith.mulf %53, %54 : vector<16x256xf32>
    %56 = arith.truncf %55 : vector<16x256xf32> to vector<16x256xbf16>
    %c48 = arith.constant 48 : index
    %c0_27 = arith.constant 0 : index
    %57 = vector.load %arg10[%c48, %c0_27] : memref<144x512xbf16, #tpu.memory_space<vmem>>, vector<16x256xbf16>
    tpu.vector_store %arg10[%c48, %c0_27], %56 {strides = array<i32>} : memref<144x512xbf16, #tpu.memory_space<vmem>>, vector<16x256xbf16>,
    %c0_28 = arith.constant 0 : index
    %c128_29 = arith.constant 128 : index
    %58 = vector.load %arg8[%c0_28, %c128_29] : memref<16x1024xf32, #tpu.memory_space<vmem>>, vector<16x256xf32>
    %59 = arith.truncf %58 : vector<16x256xf32> to vector<16x256xbf16>
    %c64 = arith.constant 64 : index
    %c0_30 = arith.constant 0 : index
    %60 = vector.load %arg10[%c64, %c0_30] : memref<144x512xbf16, #tpu.memory_space<vmem>>, vector<16x256xbf16>
    tpu.vector_store %arg10[%c64, %c0_30], %59 {strides = array<i32>} : memref<144x512xbf16, #tpu.memory_space<vmem>>, vector<16x256xbf16>,
    %c0_31 = arith.constant 0 : index
    %c129 = arith.constant 129 : index
    %61 = vector.load %arg8[%c0_31, %c129] : memref<16x1024xf32, #tpu.memory_space<vmem>>, vector<16x256xf32>
    %62 = vector.broadcast %25 : vector<1x256xf32> to vector<16x256xf32>
    %63 = arith.mulf %61, %62 : vector<16x256xf32>
    %64 = arith.truncf %63 : vector<16x256xf32> to vector<16x256xbf16>
    %c80 = arith.constant 80 : index
    %c0_32 = arith.constant 0 : index
    %65 = vector.load %arg10[%c80, %c0_32] : memref<144x512xbf16, #tpu.memory_space<vmem>>, vector<16x256xbf16>
    tpu.vector_store %arg10[%c80, %c0_32], %64 {strides = array<i32>} : memref<144x512xbf16, #tpu.memory_space<vmem>>, vector<16x256xbf16>,
    %c0_33 = arith.constant 0 : index
    %c143 = arith.constant 143 : index
    %66 = vector.load %arg8[%c0_33, %c143] : memref<16x1024xf32, #tpu.memory_space<vmem>>, vector<16x256xf32>
    %67 = vector.broadcast %21 : vector<1x256xf32> to vector<16x256xf32>
    %68 = arith.mulf %66, %67 : vector<16x256xf32>
    %69 = arith.truncf %68 : vector<16x256xf32> to vector<16x256xbf16>
    %c96 = arith.constant 96 : index
    %c0_34 = arith.constant 0 : index
    %70 = vector.load %arg10[%c96, %c0_34] : memref<144x512xbf16, #tpu.memory_space<vmem>>, vector<16x256xbf16>
    tpu.vector_store %arg10[%c96, %c0_34], %69 {strides = array<i32>} : memref<144x512xbf16, #tpu.memory_space<vmem>>, vector<16x256xbf16>,
    %c0_35 = arith.constant 0 : index
    %c144 = arith.constant 144 : index
    %71 = vector.load %arg8[%c0_35, %c144] : memref<16x1024xf32, #tpu.memory_space<vmem>>, vector<16x256xf32>
    %72 = arith.truncf %71 : vector<16x256xf32> to vector<16x256xbf16>
    %c112_36 = arith.constant 112 : index
    %c0_37 = arith.constant 0 : index
    %73 = vector.load %arg10[%c112_36, %c0_37] : memref<144x512xbf16, #tpu.memory_space<vmem>>, vector<16x256xbf16>
    tpu.vector_store %arg10[%c112_36, %c0_37], %72 {strides = array<i32>} : memref<144x512xbf16, #tpu.memory_space<vmem>>, vector<16x256xbf16>,
    %c0_38 = arith.constant 0 : index
    %c145 = arith.constant 145 : index
    %74 = vector.load %arg8[%c0_38, %c145] : memref<16x1024xf32, #tpu.memory_space<vmem>>, vector<16x256xf32>
    %75 = vector.broadcast %25 : vector<1x256xf32> to vector<16x256xf32>
    %76 = arith.mulf %74, %75 : vector<16x256xf32>
    %77 = arith.truncf %76 : vector<16x256xf32> to vector<16x256xbf16>
    %c128_39 = arith.constant 128 : index
    %c0_40 = arith.constant 0 : index
    %78 = vector.load %arg10[%c128_39, %c0_40] : memref<144x512xbf16, #tpu.memory_space<vmem>>, vector<16x256xbf16>
    tpu.vector_store %arg10[%c128_39, %c0_40], %77 {strides = array<i32>} : memref<144x512xbf16, #tpu.memory_space<vmem>>, vector<16x256xbf16>,
    %c0_41 = arith.constant 0 : index
    %c623 = arith.constant 623 : index
    %79 = vector.load %arg8[%c0_41, %c623] : memref<16x1024xf32, #tpu.memory_space<vmem>>, vector<16x256xf32>
    %80 = vector.broadcast %21 : vector<1x256xf32> to vector<16x256xf32>
    %81 = arith.mulf %79, %80 : vector<16x256xf32>
    %82 = arith.truncf %81 : vector<16x256xf32> to vector<16x256xbf16>
    %c0_42 = arith.constant 0 : index
    %c256 = arith.constant 256 : index
    %83 = vector.load %arg10[%c0_42, %c256] : memref<144x512xbf16, #tpu.memory_space<vmem>>, vector<16x256xbf16>
    tpu.vector_store %arg10[%c0_42, %c256], %82 {strides = array<i32>} : memref<144x512xbf16, #tpu.memory_space<vmem>>, vector<16x256xbf16>,
    %c0_43 = arith.constant 0 : index
    %c624 = arith.constant 624 : index
    %84 = vector.load %arg8[%c0_43, %c624] : memref<16x1024xf32, #tpu.memory_space<vmem>>, vector<16x256xf32>
    %85 = arith.truncf %84 : vector<16x256xf32> to vector<16x256xbf16>
    %c16_44 = arith.constant 16 : index
    %c256_45 = arith.constant 256 : index
    %86 = vector.load %arg10[%c16_44, %c256_45] : memref<144x512xbf16, #tpu.memory_space<vmem>>, vector<16x256xbf16>
    tpu.vector_store %arg10[%c16_44, %c256_45], %85 {strides = array<i32>} : memref<144x512xbf16, #tpu.memory_space<vmem>>, vector<16x256xbf16>,
    %c0_46 = arith.constant 0 : index
    %c625 = arith.constant 625 : index
    %87 = vector.load %arg8[%c0_46, %c625] : memref<16x1024xf32, #tpu.memory_space<vmem>>, vector<16x256xf32>
    %88 = vector.broadcast %25 : vector<1x256xf32> to vector<16x256xf32>
    %89 = arith.mulf %87, %88 : vector<16x256xf32>
    %90 = arith.truncf %89 : vector<16x256xf32> to vector<16x256xbf16>
    %c32_47 = arith.constant 32 : index
    %c256_48 = arith.constant 256 : index
    %91 = vector.load %arg10[%c32_47, %c256_48] : memref<144x512xbf16, #tpu.memory_space<vmem>>, vector<16x256xbf16>
    tpu.vector_store %arg10[%c32_47, %c256_48], %90 {strides = array<i32>} : memref<144x512xbf16, #tpu.memory_space<vmem>>, vector<16x256xbf16>,
    %c0_49 = arith.constant 0 : index
    %c639 = arith.constant 639 : index
    %92 = vector.load %arg8[%c0_49, %c639] : memref<16x1024xf32, #tpu.memory_space<vmem>>, vector<16x256xf32>
    %93 = vector.broadcast %21 : vector<1x256xf32> to vector<16x256xf32>
    %94 = arith.mulf %92, %93 : vector<16x256xf32>
    %95 = arith.truncf %94 : vector<16x256xf32> to vector<16x256xbf16>
    %c48_50 = arith.constant 48 : index
    %c256_51 = arith.constant 256 : index
    %96 = vector.load %arg10[%c48_50, %c256_51] : memref<144x512xbf16, #tpu.memory_space<vmem>>, vector<16x256xbf16>
    tpu.vector_store %arg10[%c48_50, %c256_51], %95 {strides = array<i32>} : memref<144x512xbf16, #tpu.memory_space<vmem>>, vector<16x256xbf16>,
    %c0_52 = arith.constant 0 : index
    %c640_53 = arith.constant 640 : index
    %97 = vector.load %arg8[%c0_52, %c640_53] : memref<16x1024xf32, #tpu.memory_space<vmem>>, vector<16x256xf32>
    %98 = arith.truncf %97 : vector<16x256xf32> to vector<16x256xbf16>
    %c64_54 = arith.constant 64 : index
    %c256_55 = arith.constant 256 : index
    %99 = vector.load %arg10[%c64_54, %c256_55] : memref<144x512xbf16, #tpu.memory_space<vmem>>, vector<16x256xbf16>
    tpu.vector_store %arg10[%c64_54, %c256_55], %98 {strides = array<i32>} : memref<144x512xbf16, #tpu.memory_space<vmem>>, vector<16x256xbf16>,
    %c0_56 = arith.constant 0 : index
    %c641 = arith.constant 641 : index
    %100 = vector.load %arg8[%c0_56, %c641] : memref<16x1024xf32, #tpu.memory_space<vmem>>, vector<16x256xf32>
    %101 = vector.broadcast %25 : vector<1x256xf32> to vector<16x256xf32>
    %102 = arith.mulf %100, %101 : vector<16x256xf32>
    %103 = arith.truncf %102 : vector<16x256xf32> to vector<16x256xbf16>
    %c80_57 = arith.constant 80 : index
    %c256_58 = arith.constant 256 : index
    %104 = vector.load %arg10[%c80_57, %c256_58] : memref<144x512xbf16, #tpu.memory_space<vmem>>, vector<16x256xbf16>
    tpu.vector_store %arg10[%c80_57, %c256_58], %103 {strides = array<i32>} : memref<144x512xbf16, #tpu.memory_space<vmem>>, vector<16x256xbf16>,
    %c0_59 = arith.constant 0 : index
    %c655 = arith.constant 655 : index
    %105 = vector.load %arg8[%c0_59, %c655] : memref<16x1024xf32, #tpu.memory_space<vmem>>, vector<16x256xf32>
    %106 = vector.broadcast %21 : vector<1x256xf32> to vector<16x256xf32>
    %107 = arith.mulf %105, %106 : vector<16x256xf32>
    %108 = arith.truncf %107 : vector<16x256xf32> to vector<16x256xbf16>
    %c96_60 = arith.constant 96 : index
    %c256_61 = arith.constant 256 : index
    %109 = vector.load %arg10[%c96_60, %c256_61] : memref<144x512xbf16, #tpu.memory_space<vmem>>, vector<16x256xbf16>
    tpu.vector_store %arg10[%c96_60, %c256_61], %108 {strides = array<i32>} : memref<144x512xbf16, #tpu.memory_space<vmem>>, vector<16x256xbf16>,
    %c0_62 = arith.constant 0 : index
    %c656 = arith.constant 656 : index
    %110 = vector.load %arg8[%c0_62, %c656] : memref<16x1024xf32, #tpu.memory_space<vmem>>, vector<16x256xf32>
    %111 = arith.truncf %110 : vector<16x256xf32> to vector<16x256xbf16>
    %c112_63 = arith.constant 112 : index
    %c256_64 = arith.constant 256 : index
    %112 = vector.load %arg10[%c112_63, %c256_64] : memref<144x512xbf16, #tpu.memory_space<vmem>>, vector<16x256xbf16>
    tpu.vector_store %arg10[%c112_63, %c256_64], %111 {strides = array<i32>} : memref<144x512xbf16, #tpu.memory_space<vmem>>, vector<16x256xbf16>,
    %c0_65 = arith.constant 0 : index
    %c657 = arith.constant 657 : index
    %113 = vector.load %arg8[%c0_65, %c657] : memref<16x1024xf32, #tpu.memory_space<vmem>>, vector<16x256xf32>
    %114 = vector.broadcast %25 : vector<1x256xf32> to vector<16x256xf32>
    %115 = arith.mulf %113, %114 : vector<16x256xf32>
    %116 = arith.truncf %115 : vector<16x256xf32> to vector<16x256xbf16>
    %c128_66 = arith.constant 128 : index
    %c256_67 = arith.constant 256 : index
    %117 = vector.load %arg10[%c128_66, %c256_67] : memref<144x512xbf16, #tpu.memory_space<vmem>>, vector<16x256xbf16>
    tpu.vector_store %arg10[%c128_66, %c256_67], %116 {strides = array<i32>} : memref<144x512xbf16, #tpu.memory_space<vmem>>, vector<16x256xbf16>,
    %c0_68 = arith.constant 0 : index
    %c0_69 = arith.constant 0 : index
    %118 = vector.load %arg3[%c0_68, %c0_69] : memref<8x144xbf16, #tpu.memory_space<vmem>>, vector<8x144xbf16>
    %c0_70 = arith.constant 0 : index
    %c0_71 = arith.constant 0 : index
    %119 = vector.load %arg10[%c0_70, %c0_71] : memref<144x512xbf16, #tpu.memory_space<vmem>>, vector<144x512xbf16>
    %cst_72 = arith.constant dense<0.000000e+00> : vector<8x512xf32>
    %120 = tpu.matmul %118, %119, %cst_72 {dimension_numbers = #tpu.dot_dimension_numbers<[1], [0], [0], [1], [0, 0, 1, 1], [], []>} : vector<8x144xbf16>, vector<144x512xbf16>, vector<8x512xf32> -> vector<8x512xf32>
    %c0_73 = arith.constant 0 : index
    %c0_74 = arith.constant 0 : index
    %121 = vector.load %arg4[%c0_73, %c0_74] : memref<8x1xf32, #tpu.memory_space<vmem>>, vector<8x1xf32>
    %122 = vector.broadcast %121 : vector<8x1xf32> to vector<8x512xf32>
    %123 = arith.addf %120, %122 : vector<8x512xf32>
    %cst_75 = arith.constant 0.000000e+00 : f32
    %124 = vector.broadcast %cst_75 : f32 to vector<8x512xf32>
    %125 = arith.maximumf %123, %124 : vector<8x512xf32>
    %126 = vector.extract_strided_slice %125 {offsets = [0, 0], sizes = [8, 256], strides = [1, 1]} : vector<8x512xf32> to vector<8x256xf32>
    %c0_76 = arith.constant 0 : index
    %c128_77 = arith.constant 128 : index
    %127 = vector.load %arg9[%c0_76, %c128_77] : memref<16x1024xf32, #tpu.memory_space<vmem>>, vector<8x256xf32>
    tpu.vector_store %arg9[%c0_76, %c128_77], %126 {strides = array<i32>} : memref<16x1024xf32, #tpu.memory_space<vmem>>, vector<8x256xf32>,
    %128 = vector.broadcast %0 : f32 to vector<1x256xf32>
    %c8 = arith.constant 8 : index
    %c128_78 = arith.constant 128 : index
    %129 = vector.load %arg9[%c8, %c128_78] : memref<16x1024xf32, #tpu.memory_space<vmem>>, vector<1x256xf32>
    tpu.vector_store %arg9[%c8, %c128_78], %128 {strides = array<i32>} : memref<16x1024xf32, #tpu.memory_space<vmem>>, vector<1x256xf32>,
    %130 = vector.extract_strided_slice %125 {offsets = [0, 256], sizes = [8, 256], strides = [1, 1]} : vector<8x512xf32> to vector<8x256xf32>
    %c0_79 = arith.constant 0 : index
    %c640_80 = arith.constant 640 : index
    %131 = vector.load %arg9[%c0_79, %c640_80] : memref<16x1024xf32, #tpu.memory_space<vmem>>, vector<8x256xf32>
    tpu.vector_store %arg9[%c0_79, %c640_80], %130 {strides = array<i32>} : memref<16x1024xf32, #tpu.memory_space<vmem>>, vector<8x256xf32>,
    %132 = vector.broadcast %0 : f32 to vector<1x256xf32>
    %c8_81 = arith.constant 8 : index
    %c640_82 = arith.constant 640 : index
    %133 = vector.load %arg9[%c8_81, %c640_82] : memref<16x1024xf32, #tpu.memory_space<vmem>>, vector<1x256xf32>
    tpu.vector_store %arg9[%c8_81, %c640_82], %132 {strides = array<i32>} : memref<16x1024xf32, #tpu.memory_space<vmem>>, vector<1x256xf32>,
    %c0_83 = arith.constant 0 : index
    %c111_84 = arith.constant 111 : index
    %134 = vector.load %arg9[%c0_83, %c111_84] : memref<16x1024xf32, #tpu.memory_space<vmem>>, vector<16x256xf32>
    %135 = vector.broadcast %21 : vector<1x256xf32> to vector<16x256xf32>
    %136 = arith.mulf %134, %135 : vector<16x256xf32>
    %137 = arith.truncf %136 : vector<16x256xf32> to vector<16x256xbf16>
    %c0_85 = arith.constant 0 : index
    %c0_86 = arith.constant 0 : index
    %138 = vector.load %arg11[%c0_85, %c0_86] : memref<144x512xbf16, #tpu.memory_space<vmem>>, vector<16x256xbf16>
    tpu.vector_store %arg11[%c0_85, %c0_86], %137 {strides = array<i32>} : memref<144x512xbf16, #tpu.memory_space<vmem>>, vector<16x256xbf16>,
    %c0_87 = arith.constant 0 : index
    %c112_88 = arith.constant 112 : index
    %139 = vector.load %arg9[%c0_87, %c112_88] : memref<16x1024xf32, #tpu.memory_space<vmem>>, vector<16x256xf32>
    %140 = arith.truncf %139 : vector<16x256xf32> to vector<16x256xbf16>
    %c16_89 = arith.constant 16 : index
    %c0_90 = arith.constant 0 : index
    %141 = vector.load %arg11[%c16_89, %c0_90] : memref<144x512xbf16, #tpu.memory_space<vmem>>, vector<16x256xbf16>
    tpu.vector_store %arg11[%c16_89, %c0_90], %140 {strides = array<i32>} : memref<144x512xbf16, #tpu.memory_space<vmem>>, vector<16x256xbf16>,
    %c0_91 = arith.constant 0 : index
    %c113_92 = arith.constant 113 : index
    %142 = vector.load %arg9[%c0_91, %c113_92] : memref<16x1024xf32, #tpu.memory_space<vmem>>, vector<16x256xf32>
    %143 = vector.broadcast %25 : vector<1x256xf32> to vector<16x256xf32>
    %144 = arith.mulf %142, %143 : vector<16x256xf32>
    %145 = arith.truncf %144 : vector<16x256xf32> to vector<16x256xbf16>
    %c32_93 = arith.constant 32 : index
    %c0_94 = arith.constant 0 : index
    %146 = vector.load %arg11[%c32_93, %c0_94] : memref<144x512xbf16, #tpu.memory_space<vmem>>, vector<16x256xbf16>
    tpu.vector_store %arg11[%c32_93, %c0_94], %145 {strides = array<i32>} : memref<144x512xbf16, #tpu.memory_space<vmem>>, vector<16x256xbf16>,
    %c0_95 = arith.constant 0 : index
    %c127_96 = arith.constant 127 : index
    %147 = vector.load %arg9[%c0_95, %c127_96] : memref<16x1024xf32, #tpu.memory_space<vmem>>, vector<16x256xf32>
    %148 = vector.broadcast %21 : vector<1x256xf32> to vector<16x256xf32>
    %149 = arith.mulf %147, %148 : vector<16x256xf32>
    %150 = arith.truncf %149 : vector<16x256xf32> to vector<16x256xbf16>
    %c48_97 = arith.constant 48 : index
    %c0_98 = arith.constant 0 : index
    %151 = vector.load %arg11[%c48_97, %c0_98] : memref<144x512xbf16, #tpu.memory_space<vmem>>, vector<16x256xbf16>
    tpu.vector_store %arg11[%c48_97, %c0_98], %150 {strides = array<i32>} : memref<144x512xbf16, #tpu.memory_space<vmem>>, vector<16x256xbf16>,
    %c0_99 = arith.constant 0 : index
    %c128_100 = arith.constant 128 : index
    %152 = vector.load %arg9[%c0_99, %c128_100] : memref<16x1024xf32, #tpu.memory_space<vmem>>, vector<16x256xf32>
    %153 = arith.truncf %152 : vector<16x256xf32> to vector<16x256xbf16>
    %c64_101 = arith.constant 64 : index
    %c0_102 = arith.constant 0 : index
    %154 = vector.load %arg11[%c64_101, %c0_102] : memref<144x512xbf16, #tpu.memory_space<vmem>>, vector<16x256xbf16>
    tpu.vector_store %arg11[%c64_101, %c0_102], %153 {strides = array<i32>} : memref<144x512xbf16, #tpu.memory_space<vmem>>, vector<16x256xbf16>,
    %c0_103 = arith.constant 0 : index
    %c129_104 = arith.constant 129 : index
    %155 = vector.load %arg9[%c0_103, %c129_104] : memref<16x1024xf32, #tpu.memory_space<vmem>>, vector<16x256xf32>
    %156 = vector.broadcast %25 : vector<1x256xf32> to vector<16x256xf32>
    %157 = arith.mulf %155, %156 : vector<16x256xf32>
    %158 = arith.truncf %157 : vector<16x256xf32> to vector<16x256xbf16>
    %c80_105 = arith.constant 80 : index
    %c0_106 = arith.constant 0 : index
    %159 = vector.load %arg11[%c80_105, %c0_106] : memref<144x512xbf16, #tpu.memory_space<vmem>>, vector<16x256xbf16>
    tpu.vector_store %arg11[%c80_105, %c0_106], %158 {strides = array<i32>} : memref<144x512xbf16, #tpu.memory_space<vmem>>, vector<16x256xbf16>,
    %c0_107 = arith.constant 0 : index
    %c143_108 = arith.constant 143 : index
    %160 = vector.load %arg9[%c0_107, %c143_108] : memref<16x1024xf32, #tpu.memory_space<vmem>>, vector<16x256xf32>
    %161 = vector.broadcast %21 : vector<1x256xf32> to vector<16x256xf32>
    %162 = arith.mulf %160, %161 : vector<16x256xf32>
    %163 = arith.truncf %162 : vector<16x256xf32> to vector<16x256xbf16>
    %c96_109 = arith.constant 96 : index
    %c0_110 = arith.constant 0 : index
    %164 = vector.load %arg11[%c96_109, %c0_110] : memref<144x512xbf16, #tpu.memory_space<vmem>>, vector<16x256xbf16>
    tpu.vector_store %arg11[%c96_109, %c0_110], %163 {strides = array<i32>} : memref<144x512xbf16, #tpu.memory_space<vmem>>, vector<16x256xbf16>,
    %c0_111 = arith.constant 0 : index
    %c144_112 = arith.constant 144 : index
    %165 = vector.load %arg9[%c0_111, %c144_112] : memref<16x1024xf32, #tpu.memory_space<vmem>>, vector<16x256xf32>
    %166 = arith.truncf %165 : vector<16x256xf32> to vector<16x256xbf16>
    %c112_113 = arith.constant 112 : index
    %c0_114 = arith.constant 0 : index
    %167 = vector.load %arg11[%c112_113, %c0_114] : memref<144x512xbf16, #tpu.memory_space<vmem>>, vector<16x256xbf16>
    tpu.vector_store %arg11[%c112_113, %c0_114], %166 {strides = array<i32>} : memref<144x512xbf16, #tpu.memory_space<vmem>>, vector<16x256xbf16>,
    %c0_115 = arith.constant 0 : index
    %c145_116 = arith.constant 145 : index
    %168 = vector.load %arg9[%c0_115, %c145_116] : memref<16x1024xf32, #tpu.memory_space<vmem>>, vector<16x256xf32>
    %169 = vector.broadcast %25 : vector<1x256xf32> to vector<16x256xf32>
    %170 = arith.mulf %168, %169 : vector<16x256xf32>
    %171 = arith.truncf %170 : vector<16x256xf32> to vector<16x256xbf16>
    %c128_117 = arith.constant 128 : index
    %c0_118 = arith.constant 0 : index
    %172 = vector.load %arg11[%c128_117, %c0_118] : memref<144x512xbf16, #tpu.memory_space<vmem>>, vector<16x256xbf16>
    tpu.vector_store %arg11[%c128_117, %c0_118], %171 {strides = array<i32>} : memref<144x512xbf16, #tpu.memory_space<vmem>>, vector<16x256xbf16>,
    %c0_119 = arith.constant 0 : index
    %c623_120 = arith.constant 623 : index
    %173 = vector.load %arg9[%c0_119, %c623_120] : memref<16x1024xf32, #tpu.memory_space<vmem>>, vector<16x256xf32>
    %174 = vector.broadcast %21 : vector<1x256xf32> to vector<16x256xf32>
    %175 = arith.mulf %173, %174 : vector<16x256xf32>
    %176 = arith.truncf %175 : vector<16x256xf32> to vector<16x256xbf16>
    %c0_121 = arith.constant 0 : index
    %c256_122 = arith.constant 256 : index
    %177 = vector.load %arg11[%c0_121, %c256_122] : memref<144x512xbf16, #tpu.memory_space<vmem>>, vector<16x256xbf16>
    tpu.vector_store %arg11[%c0_121, %c256_122], %176 {strides = array<i32>} : memref<144x512xbf16, #tpu.memory_space<vmem>>, vector<16x256xbf16>,
    %c0_123 = arith.constant 0 : index
    %c624_124 = arith.constant 624 : index
    %178 = vector.load %arg9[%c0_123, %c624_124] : memref<16x1024xf32, #tpu.memory_space<vmem>>, vector<16x256xf32>
    %179 = arith.truncf %178 : vector<16x256xf32> to vector<16x256xbf16>
    %c16_125 = arith.constant 16 : index
    %c256_126 = arith.constant 256 : index
    %180 = vector.load %arg11[%c16_125, %c256_126] : memref<144x512xbf16, #tpu.memory_space<vmem>>, vector<16x256xbf16>
    tpu.vector_store %arg11[%c16_125, %c256_126], %179 {strides = array<i32>} : memref<144x512xbf16, #tpu.memory_space<vmem>>, vector<16x256xbf16>,
    %c0_127 = arith.constant 0 : index
    %c625_128 = arith.constant 625 : index
    %181 = vector.load %arg9[%c0_127, %c625_128] : memref<16x1024xf32, #tpu.memory_space<vmem>>, vector<16x256xf32>
    %182 = vector.broadcast %25 : vector<1x256xf32> to vector<16x256xf32>
    %183 = arith.mulf %181, %182 : vector<16x256xf32>
    %184 = arith.truncf %183 : vector<16x256xf32> to vector<16x256xbf16>
    %c32_129 = arith.constant 32 : index
    %c256_130 = arith.constant 256 : index
    %185 = vector.load %arg11[%c32_129, %c256_130] : memref<144x512xbf16, #tpu.memory_space<vmem>>, vector<16x256xbf16>
    tpu.vector_store %arg11[%c32_129, %c256_130], %184 {strides = array<i32>} : memref<144x512xbf16, #tpu.memory_space<vmem>>, vector<16x256xbf16>,
    %c0_131 = arith.constant 0 : index
    %c639_132 = arith.constant 639 : index
    %186 = vector.load %arg9[%c0_131, %c639_132] : memref<16x1024xf32, #tpu.memory_space<vmem>>, vector<16x256xf32>
    %187 = vector.broadcast %21 : vector<1x256xf32> to vector<16x256xf32>
    %188 = arith.mulf %186, %187 : vector<16x256xf32>
    %189 = arith.truncf %188 : vector<16x256xf32> to vector<16x256xbf16>
    %c48_133 = arith.constant 48 : index
    %c256_134 = arith.constant 256 : index
    %190 = vector.load %arg11[%c48_133, %c256_134] : memref<144x512xbf16, #tpu.memory_space<vmem>>, vector<16x256xbf16>
    tpu.vector_store %arg11[%c48_133, %c256_134], %189 {strides = array<i32>} : memref<144x512xbf16, #tpu.memory_space<vmem>>, vector<16x256xbf16>,
    %c0_135 = arith.constant 0 : index
    %c640_136 = arith.constant 640 : index
    %191 = vector.load %arg9[%c0_135, %c640_136] : memref<16x1024xf32, #tpu.memory_space<vmem>>, vector<16x256xf32>
    %192 = arith.truncf %191 : vector<16x256xf32> to vector<16x256xbf16>
    %c64_137 = arith.constant 64 : index
    %c256_138 = arith.constant 256 : index
    %193 = vector.load %arg11[%c64_137, %c256_138] : memref<144x512xbf16, #tpu.memory_space<vmem>>, vector<16x256xbf16>
    tpu.vector_store %arg11[%c64_137, %c256_138], %192 {strides = array<i32>} : memref<144x512xbf16, #tpu.memory_space<vmem>>, vector<16x256xbf16>,
    %c0_139 = arith.constant 0 : index
    %c641_140 = arith.constant 641 : index
    %194 = vector.load %arg9[%c0_139, %c641_140] : memref<16x1024xf32, #tpu.memory_space<vmem>>, vector<16x256xf32>
    %195 = vector.broadcast %25 : vector<1x256xf32> to vector<16x256xf32>
    %196 = arith.mulf %194, %195 : vector<16x256xf32>
    %197 = arith.truncf %196 : vector<16x256xf32> to vector<16x256xbf16>
    %c80_141 = arith.constant 80 : index
    %c256_142 = arith.constant 256 : index
    %198 = vector.load %arg11[%c80_141, %c256_142] : memref<144x512xbf16, #tpu.memory_space<vmem>>, vector<16x256xbf16>
    tpu.vector_store %arg11[%c80_141, %c256_142], %197 {strides = array<i32>} : memref<144x512xbf16, #tpu.memory_space<vmem>>, vector<16x256xbf16>,
    %c0_143 = arith.constant 0 : index
    %c655_144 = arith.constant 655 : index
    %199 = vector.load %arg9[%c0_143, %c655_144] : memref<16x1024xf32, #tpu.memory_space<vmem>>, vector<16x256xf32>
    %200 = vector.broadcast %21 : vector<1x256xf32> to vector<16x256xf32>
    %201 = arith.mulf %199, %200 : vector<16x256xf32>
    %202 = arith.truncf %201 : vector<16x256xf32> to vector<16x256xbf16>
    %c96_145 = arith.constant 96 : index
    %c256_146 = arith.constant 256 : index
    %203 = vector.load %arg11[%c96_145, %c256_146] : memref<144x512xbf16, #tpu.memory_space<vmem>>, vector<16x256xbf16>
    tpu.vector_store %arg11[%c96_145, %c256_146], %202 {strides = array<i32>} : memref<144x512xbf16, #tpu.memory_space<vmem>>, vector<16x256xbf16>,
    %c0_147 = arith.constant 0 : index
    %c656_148 = arith.constant 656 : index
    %204 = vector.load %arg9[%c0_147, %c656_148] : memref<16x1024xf32, #tpu.memory_space<vmem>>, vector<16x256xf32>
    %205 = arith.truncf %204 : vector<16x256xf32> to vector<16x256xbf16>
    %c112_149 = arith.constant 112 : index
    %c256_150 = arith.constant 256 : index
    %206 = vector.load %arg11[%c112_149, %c256_150] : memref<144x512xbf16, #tpu.memory_space<vmem>>, vector<16x256xbf16>
    tpu.vector_store %arg11[%c112_149, %c256_150], %205 {strides = array<i32>} : memref<144x512xbf16, #tpu.memory_space<vmem>>, vector<16x256xbf16>,
    %c0_151 = arith.constant 0 : index
    %c657_152 = arith.constant 657 : index
    %207 = vector.load %arg9[%c0_151, %c657_152] : memref<16x1024xf32, #tpu.memory_space<vmem>>, vector<16x256xf32>
    %208 = vector.broadcast %25 : vector<1x256xf32> to vector<16x256xf32>
    %209 = arith.mulf %207, %208 : vector<16x256xf32>
    %210 = arith.truncf %209 : vector<16x256xf32> to vector<16x256xbf16>
    %c128_153 = arith.constant 128 : index
    %c256_154 = arith.constant 256 : index
    %211 = vector.load %arg11[%c128_153, %c256_154] : memref<144x512xbf16, #tpu.memory_space<vmem>>, vector<16x256xbf16>
    tpu.vector_store %arg11[%c128_153, %c256_154], %210 {strides = array<i32>} : memref<144x512xbf16, #tpu.memory_space<vmem>>, vector<16x256xbf16>,
    %c0_155 = arith.constant 0 : index
    %c0_156 = arith.constant 0 : index
    %212 = vector.load %arg5[%c0_155, %c0_156] : memref<4x144xbf16, #tpu.memory_space<vmem>>, vector<4x144xbf16>
    %c0_157 = arith.constant 0 : index
    %c0_158 = arith.constant 0 : index
    %213 = vector.load %arg11[%c0_157, %c0_158] : memref<144x512xbf16, #tpu.memory_space<vmem>>, vector<144x512xbf16>
    %cst_159 = arith.constant dense<0.000000e+00> : vector<4x512xf32>
    %214 = tpu.matmul %212, %213, %cst_159 {dimension_numbers = #tpu.dot_dimension_numbers<[1], [0], [0], [1], [0, 0, 1, 1], [], []>} : vector<4x144xbf16>, vector<144x512xbf16>, vector<4x512xf32> -> vector<4x512xf32>
    %c0_160 = arith.constant 0 : index
    %c0_161 = arith.constant 0 : index
    %215 = vector.load %arg6[%c0_160, %c0_161] : memref<4x1xf32, #tpu.memory_space<vmem>>, vector<4x1xf32>
    %216 = vector.broadcast %215 : vector<4x1xf32> to vector<4x512xf32>
    %217 = arith.addf %214, %216 : vector<4x512xf32>
    %cst_162 = arith.constant 0.000000e+00 : f32
    %218 = vector.broadcast %cst_162 : f32 to vector<4x512xf32>
    %219 = arith.maximumf %217, %218 : vector<4x512xf32>
    %220 = vector.extract_strided_slice %219 {offsets = [0, 0], sizes = [4, 256], strides = [1, 1]} : vector<4x512xf32> to vector<4x256xf32>
    %c0_163 = arith.constant 0 : index
    %c0_164 = arith.constant 0 : index
    %c0_165 = arith.constant 0 : index
    %221 = vector.load %arg7[%c0_163, %c0_164, %c0_165] : memref<2x4x256xf32, #tpu.memory_space<vmem>>, vector<1x4x256xf32>
    %222 = vector.shape_cast %221 : vector<1x4x256xf32> to vector<4x256xf32>
    %223 = vector.shape_cast %220 : vector<4x256xf32> to vector<1x4x256xf32>
    tpu.vector_store %arg7[%c0_163, %c0_164, %c0_165], %223 {strides = array<i32>} : memref<2x4x256xf32, #tpu.memory_space<vmem>>, vector<1x4x256xf32>,
    %224 = vector.extract_strided_slice %219 {offsets = [0, 256], sizes = [4, 256], strides = [1, 1]} : vector<4x512xf32> to vector<4x256xf32>
    %c1_166 = arith.constant 1 : index
    %c0_167 = arith.constant 0 : index
    %c0_168 = arith.constant 0 : index
    %225 = vector.load %arg7[%c1_166, %c0_167, %c0_168] : memref<2x4x256xf32, #tpu.memory_space<vmem>>, vector<1x4x256xf32>
    %226 = vector.shape_cast %225 : vector<1x4x256xf32> to vector<4x256xf32>
    %227 = vector.shape_cast %224 : vector<4x256xf32> to vector<1x4x256xf32>
    tpu.vector_store %arg7[%c1_166, %c0_167, %c0_168], %227 {strides = array<i32>} : memref<2x4x256xf32, #tpu.memory_space<vmem>>, vector<1x4x256xf32>,
    return
  }
  func.func @transform_0(%arg0: i32) -> i32 {
    %c0_i32 = arith.constant 0 : i32
    %c0_i32_0 = arith.constant 0 : i32
    return %c0_i32 : i32
  }
  func.func @transform_1(%arg0: i32) -> (i32, i32, i32) {
    %c0_i32 = arith.constant 0 : i32
    %c0_i32_0 = arith.constant 0 : i32
    %c0_i32_1 = arith.constant 0 : i32
    %c0_i32_2 = arith.constant 0 : i32
    return %c0_i32, %c0_i32_0, %c0_i32_1 : i32, i32, i32
  }
  func.func @transform_2(%arg0: i32) -> (i32, i32) {
    %c0_i32 = arith.constant 0 : i32
    %c0_i32_0 = arith.constant 0 : i32
    %c0_i32_1 = arith.constant 0 : i32
    return %c0_i32, %c0_i32_0 : i32, i32
  }
  func.func @transform_3(%arg0: i32) -> (i32, i32) {
    %c0_i32 = arith.constant 0 : i32
    %c0_i32_0 = arith.constant 0 : i32
    %c0_i32_1 = arith.constant 0 : i32
    return %c0_i32, %c0_i32_0 : i32, i32
  }
  func.func @transform_4(%arg0: i32) -> (i32, i32) {
    %c0_i32 = arith.constant 0 : i32
    %c0_i32_0 = arith.constant 0 : i32
    %c0_i32_1 = arith.constant 0 : i32
    return %c0_i32, %c0_i32_0 : i32, i32
  }
  func.func @transform_5(%arg0: i32) -> (i32, i32) {
    %c0_i32 = arith.constant 0 : i32
    %c0_i32_0 = arith.constant 0 : i32
    %c0_i32_1 = arith.constant 0 : i32
    return %c0_i32, %c0_i32_0 : i32, i32
  }
  func.func @transform_6(%arg0: i32) -> (i32, i32, i32) {
    %c0_i32 = arith.constant 0 : i32
    %c0_i32_0 = arith.constant 0 : i32
    %c0_i32_1 = arith.constant 0 : i32
    %c0_i32_2 = arith.constant 0 : i32
    return %c0_i32, %c0_i32_0, %c0_i32_1 : i32, i32, i32
  }
}

</mosaic_0001>

<bundles_post_ra>
// kernel: odefunc_abstract_forward.1
= control target key start
LH: loop header
LB: loop body
LE: loop exit
PB: predicated region body
PF: predicated region fallthrough
CT: control target
= control target key end

     0   :  { %v26_v0 = vlaneseq  ;;  %v2825_v1 = vmov 0.0   ;;  %s2828_s27 = smov 1   ;;  %s2829_s28 = smov 113   ;;  %v2832_v20 = vmov 0.0|0.0   ;;  %v2835_v28 = vmov 0   ;;  %s3707_s0 = inlined_call_operand.<no memory space> [shape: f32[1], index: 0, kind: input, shape index: {}]   ;;  %s3708_s1 = inlined_call_operand.vmem [shape: f32[2,4,256], index: 1, kind: input, shape index: {}]   ;;  %s3709_s2 = inlined_call_operand.vmem [shape: bf16[8,144], index: 2, kind: input, shape index: {}]   ;;  %s3710_s3 = inlined_call_operand.vmem [shape: f32[8,1], index: 3, kind: input, shape index: {}]   ;;  %s3711_s4 = inlined_call_operand.vmem [shape: bf16[4,144], index: 4, kind: input, shape index: {}]   ;;  %s3712_s5 = inlined_call_operand.vmem [shape: f32[4,1], index: 5, kind: input, shape index: {}]   ;;  %s3713_s6 = inlined_call_operand.vmem [shape: f32[2,4,256], index: 6, kind: output, shape index: {}]  }
   0x1   :  { %66 = vst [vmem:[#allocation2 + $0x8] sm:$0xff] %v2825_v1  ;;  %67 = vst [vmem:[#allocation2 + $0x10] sm:$0xff] %v2825_v1  ;;  %v103_v2 = vstv %s3707_s0  ;;  %v97_v3 = vld [vmem:[%s3708_s1] sm:$0xff]  ;;  %v2418_v4 = vld [vmem:[%s3708_s1 + $0x8] sm:$0xff]  ;;  %s2826_s0 = smov 15   ;;  %s2827_s1 = smov 127   ;;  %2819 = vset.pattern.permute.xlu0 %v2835_v28 }
   0x2   :  { %70 = vst [vmem:[#allocation2 + $0x28] sm:$0xff] %v2825_v1  ;;  %71 = vst [vmem:[#allocation2 + $0x30] sm:$0xff] %v2825_v1  ;;  %v27_v5 = vand.u32 127, %v26_v0  ;;  %vm106_vm0 = vcmp.lt.s32.totalorder %v26_v0, 256  ;;  %v99_v6 = vcombine.high %v97_v3, %v97_v3  ;;  %v114_v7 = vcombine.high %v2418_v4, %v2418_v4  ;;  %s2830_s29 = smov 111   ;;  %s2831_s30 = smov 17  }
   0x3   :  { %90 = vst [vmem:[#allocation3 + $0x48] sm:$0xff] %v2825_v1  ;;  %91 = vst [vmem:[#allocation3 + $0x50] sm:$0xff] %v2825_v1  ;;  %s2833_s7 = smov 112   ;;  %s2834_s8 = smov 16   ;;  %vm277_vm5 = vcmask 121856   ;;  %vm335_vm6 = vcmask 7168  }
   0x4   :  { %94 = vst [vmem:[#allocation3 + $0x68] sm:$0xff] %v2825_v1  ;;  %95 = vst [vmem:[#allocation3 + $0x70] sm:$0xff] %v2825_v1  ;;  %v28_v8 = vadd.s32 128, %v27_v5  ;;  %v33_v9 = vand.u32 15, %v27_v5  ;;  %vm295_vm7 = vcmask 1039360   ;;  %vm172_vm8 = vcmask 1043456  }
   0x5   :  { %65 = vst [vmem:[#allocation2] sm:$0xff] %v2825_v1  ;;  %101 = vst [vmem:[#allocation2 + $0x8] sm:$0xf] %v97_v3  ;;  %vm512_vm9 = vcmask 916480   ;;  %vm237_vm10 = vcmask 924672   ;;  %vm133_vm11 = vcmask 908288  }
   0x6   :  { %116 = vst [vmem:[#allocation2 + $0x28] sm:$0xf] %v2418_v4  ;;  %109 = vst.msk [vmem:[#allocation2 + $0xc] ss:$8 sm:$0x3] %vm106_vm0, %v103_v2  ;;  %v40_v10 = vand.u32 15, %v28_v8 }
   0x7   :  { %119 = vst.msk [vmem:[#allocation2 + $0x2c] ss:$8 sm:$0x3] %vm106_vm0, %v103_v2  ;;  %1290 = vst.msk [vmem:[#allocation3 + $0x48] ss:$8 sm:$0x3] %vm106_vm0, %v103_v2 }
   0x8   :  { %1295 = vst.msk [vmem:[#allocation3 + $0x68] ss:$8 sm:$0x3] %vm106_vm0, %v103_v2  ;;  %102 = vst [vmem:[#allocation2 + $0x10] sm:$0xf] %v99_v6  ;;  %vm53_vm1 = vcmp.ge.s32.totalorder %v33_v9, 1 }
   0x9   :  { %117 = vst [vmem:[#allocation2 + $0x30] sm:$0xf] %v114_v7  ;;  %vm59_vm2 = vcmp.le.s32.totalorder %v33_v9, 14  ;;  %v2414_v11 = vsel %vm53_vm1, 1.0, %v2825_v1  ;;  %vm54_vm3 = vcmp.ge.s32.totalorder %v40_v10, 1  ;;  %vm60_vm4 = vcmp.le.s32.totalorder %v40_v10, 14 }
   0xa   :  { %v2415_v12 = vsel %vm54_vm3, 1.0, %v2825_v1  ;;  %v2416_v13 = vsel %vm59_vm2, 1.0, %v2825_v1  ;;  %v2417_v14 = vsel %vm60_vm4, 1.0, %v2825_v1  ;;  %vm174_vm12 = vcmask 138240  }
   0xb   :  { %v2789_v15 = vpack.i.bf16 %v2415_v12, %v2414_v11  ;;  %v2794_v16 = vpack.i.bf16 %v2417_v14, %v2416_v13  ;;  %vm217_vm13 = vcmask 130048  }
   0xd   :  { %2790 = vrot.lane.b32.xlu0 %v2789_v15, %s2826_s0  ;;  %2800 = vrot.lane.b32.xlu1 %v2789_v15, %s2827_s1  ;;  %v2897_v17 = vld [vmem:[#allocation2 + $0x8] sm:$0xff] }
   0xe   :  { %v2908_v21 = vld [vmem:[#allocation2 + $0x28] sm:$0xff]  ;;  %v2639_v25 = vpack.c.bf16 %v2897_v17, %v2825_v1 }
   0xf   :  { %v2899_v18 = vld [vmem:[#allocation2 + $0x10] sm:$0xff]  ;;  %v2673_v27 = vpack.c.bf16 %v2908_v21, %v2825_v1 }
  0x10   :  { %v2661_v19 = vpack.c.bf16 %v2899_v18, %v2897_v17  ;;  %v2910_v22 = vld [vmem:[#allocation2 + $0x30] sm:$0xff]  ;;  %v2640_v24 = vpack.c.bf16 %v2899_v18, %v2899_v18 }
  0x11   :  { %2795 = vrot.lane.b32.xlu0 %v2794_v16, %s2828_s27  ;;  %2805 = vrot.lane.b32.xlu1 %v2794_v16, %s2829_s28  ;;  %v2695_v23 = vpack.c.bf16 %v2910_v22, %v2908_v21  ;;  %v2674_v26 = vpack.c.bf16 %v2910_v22, %v2910_v22 }
  0x15   :  { %2810 = vrot.lane.b32.xlu0 %v2789_v15, %s2830_s29  ;;  %2815 = vrot.lane.b32.xlu1 %v2794_v16, %s2831_s30 }
  0x19   :  { %501 = vrot.lane.b32.xlu1 %v2832_v20, %s2833_s7  ;;  %499 = vrot.lane.b32.xlu0 %v2661_v19, %s2833_s7 }
  0x1d   :  { %505 = vrot.lane.b32.xlu1 %v2832_v20, %s2833_s7  ;;  %503 = vrot.lane.b32.xlu0 %v2832_v20, %s2833_s7 }
  0x21   :  { %902 = vrot.lane.b32.xlu1 %v2832_v20, %s2833_s7  ;;  %900 = vrot.lane.b32.xlu0 %v2695_v23, %s2833_s7 }
  0x25   :  { %906 = vrot.lane.b32.xlu1 %v2832_v20, %s2833_s7  ;;  %904 = vrot.lane.b32.xlu0 %v2832_v20, %s2833_s7 }
  0x29   :  { %206 = vrot.lane.b32.xlu1 %v2640_v24, %s2834_s8  ;;  %204 = vrot.lane.b32.xlu0 %v2639_v25, %s2834_s8 }
  0x2d   :  { %210 = vrot.lane.b32.xlu1 %v2832_v20, %s2834_s8  ;;  %208 = vrot.lane.b32.xlu0 %v2832_v20, %s2834_s8 }
  0x31   :  { %650 = vrot.lane.b32.xlu1 %v2674_v26, %s2834_s8  ;;  %648 = vrot.lane.b32.xlu0 %v2673_v27, %s2834_s8 }
  0x35   :  { %654 = vrot.lane.b32.xlu1 %v2832_v20, %s2834_s8  ;;  %652 = vrot.lane.b32.xlu0 %v2832_v20, %s2834_s8 }
  0x7f   :  { %v2791_v29 = vpop.permute.xlu0 %2790  ;;  %v2801_v30 = vpop.permute.xlu1 %2800 }
  0x80   :  { %v2793_v31 = vunpack.i.h.bf16 %v2791_v29  ;;  %v2945_v32 = vunpack.i.l.bf16 %v2791_v29  ;;  %v2998_v2 = vunpack.i.h.bf16 %v2801_v30  ;;  %v3000_v3 = vunpack.i.l.bf16 %v2801_v30 }
  0x82   :  { %v436_v33 = vmul.f32 0.0, %v2793_v31  ;;  %v2949_v34 = vsel %vm277_vm5, %v2945_v32, %v2793_v31  ;;  %v434_v35 = vmul.f32 %v2945_v32, %v2897_v17  ;;  %v437_v41 = vmul.f32 0.0, %v2945_v32 }
  0x83   :  { %v435_v36 = vmul.f32 %v2899_v18, %v2949_v34  ;;  %v2796_v37 = vpop.permute.xlu0 %2795  ;;  %v2955_v38 = vpop.permute.xlu1 %2805  ;;  %v438_v42 = vmul.f32 0.0, %v2949_v34  ;;  %v836_v48 = vmul.f32 %v2945_v32, %v2908_v21  ;;  %v837_v49 = vmul.f32 %v2910_v22, %v2949_v34 }
  0x84   :  { %v2957_v39 = vpack.c.bf16 %v436_v33, %v436_v33  ;;  %v2798_v45 = vunpack.i.h.bf16 %v2796_v37  ;;  %v2968_v46 = vunpack.i.l.bf16 %v2796_v37  ;;  %v3012_v11 = vsel %vm295_vm7, %v3000_v3, %v2998_v2 }
  0x85   :  { %v2657_v40 = vpack.c.bf16 %v435_v36, %v434_v35  ;;  %v2659_v47 = vpack.c.bf16 %v438_v42, %v437_v41  ;;  %v2691_v53 = vpack.c.bf16 %v837_v49, %v836_v48  ;;  %v302_v13 = vmul.f32 %v2998_v2, %v2899_v18 }
  0x86   :  { %458 = vrot.lane.b32.xlu1 %v2957_v39, %s2829_s28  ;;  %v2979_v52 = vsel %vm335_vm6, %v2968_v46, %v2798_v45  ;;  %v378_v54 = vmul.f32 0.0, %v2798_v45  ;;  %v376_v55 = vmul.f32 %v2968_v46, %v2897_v17  ;;  %v379_v61 = vmul.f32 0.0, %v2968_v46 }
  0x87   :  { %456 = vrot.lane.b32.xlu0 %v2657_v40, %s2829_s28  ;;  %v2964_v43 = vpop.permute.xlu0 %2810  ;;  %v2966_v44 = vpop.permute.xlu1 %2815  ;;  %v377_v56 = vmul.f32 %v2899_v18, %v2979_v52  ;;  %v380_v62 = vmul.f32 0.0, %v2979_v52  ;;  %v788_v5 = vmul.f32 %v2968_v46, %v2908_v21  ;;  %v789_v6 = vmul.f32 %v2910_v22, %v2979_v52 }
  0x88   :  { %v2990_v59 = vpack.c.bf16 %v378_v54, %v378_v54  ;;  %v3022_v25 = vmul.f32 0.0, %v3000_v3  ;;  %v301_v26 = vmul.f32 %v2897_v17, %v3012_v11  ;;  %v2648_v35 = vpack.c.bf16 %v302_v13, %v302_v13 }
  0x89   :  { %v2653_v60 = vpack.c.bf16 %v377_v56, %v376_v55  ;;  %v2655_v4 = vpack.c.bf16 %v380_v62, %v379_v61  ;;  %v2687_v12 = vpack.c.bf16 %v789_v6, %v788_v5  ;;  %v305_v41 = vmul.f32 0.0, %v2998_v2 }
  0x8a   :  { %462 = vrot.lane.b32.xlu1 %v2957_v39, %s2829_s28  ;;  %v2647_v37 = vpack.c.bf16 %v301_v26, %v3022_v25  ;;  %v304_v45 = vmul.f32 0.0, %v3012_v11  ;;  %v724_v54 = vmul.f32 %v2998_v2, %v2910_v22  ;;  %v723_v56 = vmul.f32 %v2908_v21, %v3012_v11 }
  0x8b   :  { %460 = vrot.lane.b32.xlu0 %v2659_v47, %s2829_s28  ;;  %v502_v50 = vpop.permute.xlu1 %501  ;;  %v500_v51 = vpop.permute.xlu0 %499 }
  0x8c   :  { %v508_v7 = vrot.slane %v502_v50, 4  ;;  %v507_v8 = vrot.slane %v500_v51, 4  ;;  %v2650_v50 = vpack.c.bf16 %v305_v41, %v305_v41  ;;  %v2649_v55 = vpack.c.bf16 %v304_v45, %v3022_v25 }
  0x8e   :  { %860 = vrot.lane.b32.xlu1 %v2957_v39, %s2829_s28  ;;  %v511_v23 = vsel %vm172_vm8, %v507_v8, %v508_v7  ;;  %v3076_v7 = vunpack.i.h.bf16 %v2964_v43  ;;  %v3079_v8 = vunpack.i.l.bf16 %v2964_v43 }
  0x8f   :  { %858 = vrot.lane.b32.xlu0 %v2691_v53, %s2829_s28  ;;  %v506_v57 = vpop.permute.xlu1 %505  ;;  %v504_v58 = vpop.permute.xlu0 %503  ;;  %v513_v27 = vsel %vm512_vm9, %v500_v51, %v511_v23  ;;  %v3041_v51 = vunpack.i.h.bf16 %v2955_v38  ;;  %v3044_v53 = vunpack.i.l.bf16 %v2955_v38 }
  0x90   :  { %v510_v9 = vrot.slane %v506_v57, 4  ;;  %v509_v10 = vrot.slane %v504_v58, 4  ;;  %v2682_v57 = vpack.c.bf16 %v724_v54, %v724_v54  ;;  %v143_v26 = vmul.f32 0.0, %v3076_v7  ;;  %v3151_v54 = vld [vmem:[%s3709_s2] sm:$0xff] }
  0x91   :  { %v3056_v38 = vsel %vm237_vm10, %v3044_v53, %v3041_v51  ;;  %v3064_v61 = vmul.f32 0.0, %v3044_v53 }
  0x92   :  { %864 = vrot.lane.b32.xlu1 %v2957_v39, %s2829_s28  ;;  %v514_v24 = vsel %vm172_vm8, %v509_v10, %v510_v9  ;;  %v243_v62 = vmul.f32 %v2897_v17, %v3056_v38  ;;  %v246_v5 = vmul.f32 0.0, %v3056_v38  ;;  %v676_v9 = vmul.f32 %v3041_v51, %v2910_v22 }
  0x93   :  { %862 = vrot.lane.b32.xlu0 %v2659_v47, %s2829_s28  ;;  %v903_v63 = vpop.permute.xlu1 %902  ;;  %v901_v0 = vpop.permute.xlu0 %900  ;;  %v515_v28 = vsel %vm512_vm9, %v504_v58, %v514_v24  ;;  %v2681_v58 = vpack.c.bf16 %v723_v56, %v3022_v25 }
  0x94   :  { %v909_v16 = vrot.slane %v903_v63, 4  ;;  %v908_v19 = vrot.slane %v901_v0, 4  ;;  %v2518_v29 = vcombine.high %v513_v27, %v515_v28  ;;  %v2517_v31 = vcombine.low %v513_v27, %v515_v28 }
  0x95   :  { %v2645_v10 = vpack.c.bf16 %v246_v5, %v3064_v61  ;;  %v2678_v13 = vpack.c.bf16 %v676_v9, %v676_v9  ;;  %v2638_v28 = vpack.c.bf16 %v143_v26, %v143_v26  ;;  %v3184_v5 = vld [vmem:[#allocation3 + $0x70] sm:$0xff] }
  0x96   :  { %400 = vrot.lane.b32.xlu1 %v2990_v59, %s2827_s1  ;;  %1201 = vmatprep.subr.bf16.mxu0 %v2518_v29  ;;  %v912_v36 = vsel %vm172_vm8, %v908_v19, %v909_v16  ;;  %v3099_v16 = vmul.f32 0.0, %v3079_v8  ;;  %v3111_v29 = vunpack.i.h.bf16 %v2966_v44 }
  0x97   :  { %398 = vrot.lane.b32.xlu0 %v2653_v60, %s2827_s1  ;;  %v907_v14 = vpop.permute.xlu1 %906  ;;  %v905_v15 = vpop.permute.xlu0 %904  ;;  %1202 = vmatpush1.bf16.msra.mxu0 %v2517_v31  ;;  %v913_v40 = vsel %vm512_vm9, %v901_v0, %v912_v36  ;;  %v244_v60 = vmul.f32 %v3041_v51, %v2899_v18  ;;  %v2643_v0 = vpack.c.bf16 %v243_v62, %v3064_v61 }
  0x98   :  { %v911_v30 = vrot.slane %v907_v14, 4  ;;  %v910_v33 = vrot.slane %v905_v15, 4  ;;  %v3091_v14 = vsel %vm133_vm11, %v3079_v8, %v3076_v7  ;;  %v586_v31 = vmul.f32 %v3076_v7, %v2910_v22 }
  0x99   :  { %v2644_v63 = vpack.c.bf16 %v244_v60, %v244_v60  ;;  %v139_v19 = vmul.f32 %v2897_v17, %v3091_v14  ;;  %v142_v27 = vmul.f32 0.0, %v3091_v14  ;;  %v3172_v60 = vld [vmem:[#allocation3 + $0x50] sm:$0xff] }
  0x9a   :  { %404 = vrot.lane.b32.xlu1 %v2990_v59, %s2827_s1  ;;  %v914_v42 = vsel %vm172_vm8, %v910_v33, %v911_v30  ;;  %v3114_v30 = vunpack.i.l.bf16 %v2966_v44  ;;  %v2670_v36 = vpack.c.bf16 %v586_v31, %v586_v31 }
  0x9b   :  { %402 = vrot.lane.b32.xlu0 %v2655_v4, %s2827_s1  ;;  %v915_v47 = vsel %vm512_vm9, %v905_v15, %v914_v42  ;;  %v140_v15 = vmul.f32 %v3076_v7, %v2899_v18  ;;  %v2635_v24 = vpack.c.bf16 %v139_v19, %v3099_v16  ;;  %v2637_v33 = vpack.c.bf16 %v142_v27, %v3099_v16 }
  0x9c   :  { %v2520_v48 = vcombine.high %v913_v40, %v915_v47  ;;  %v2519_v49 = vcombine.low %v913_v40, %v915_v47  ;;  %v537_v40 = vmul.f32 0.0, %v3111_v29  ;;  %v535_v41 = vmul.f32 %v3114_v30, %v2897_v17 }
  0x9d   :  { %v2636_v23 = vpack.c.bf16 %v140_v15, %v140_v15  ;;  %v926_v17 = vmul.f32 %v3114_v30, %v2908_v21  ;;  %v1949_v19 = vmul.f32 %v3184_v5, %v2949_v34 }
  0x9e   :  { %812 = vrot.lane.b32.xlu1 %v2990_v59, %s2827_s1  ;;  %1242 = vmatprep.subr.bf16.mxu1 %v2520_v48  ;;  %v2666_v45 = vpack.c.bf16 %v537_v40, %v537_v40  ;;  %v538_v48 = vmul.f32 0.0, %v3114_v30 }
  0x9f   :  { %810 = vrot.lane.b32.xlu0 %v2687_v12, %s2827_s1  ;;  %1243 = vmatpush1.bf16.msra.mxu1 %v2519_v49  ;;  %v675_v12 = vmul.f32 %v2908_v21, %v3056_v38 }
  0xa1   :  { %v2677_v43 = vpack.c.bf16 %v675_v12, %v3064_v61 }
  0xa2   :  { %816 = vrot.lane.b32.xlu1 %v2990_v59, %s2827_s1 }
  0xa3   :  { %814 = vrot.lane.b32.xlu0 %v2655_v4, %s2827_s1  ;;  %v247_v4 = vmul.f32 0.0, %v3041_v51 }
  0xa5   :  { %v2646_v6 = vpack.c.bf16 %v247_v4, %v247_v4  ;;  %v3182_v4 = vld [vmem:[#allocation3 + $0x68] sm:$0xff] }
  0xa6   :  { %324 = vrot.lane.b32.xlu1 %v2648_v35, %s2828_s27  ;;  %v585_v35 = vmul.f32 %v2908_v21, %v3091_v14  ;;  %v3159_v21 = vpop.permute.xlu1 %206  ;;  %v1948_v15 = vmul.f32 %v2945_v32, %v3182_v4 }
  0xa7   :  { %322 = vrot.lane.b32.xlu0 %v2647_v37, %s2828_s27  ;;  %v3126_v37 = vsel %vm174_vm12, %v3114_v30, %v3111_v29 }
  0xa8   :  { %v2669_v44 = vpack.c.bf16 %v585_v35, %v3099_v16  ;;  %v536_v42 = vmul.f32 %v3126_v37, %v2899_v18  ;;  %v539_v49 = vmul.f32 0.0, %v3126_v37  ;;  %v927_v18 = vmul.f32 %v2910_v22, %v3126_v37  ;;  %v3162_v22 = vpop.permute.xlu0 %204 }
  0xa9   :  { %v2761_v26 = vpack.c.bf16 %v1949_v19, %v1948_v15  ;;  %v1900_v35 = vmul.f32 %v2968_v46, %v3182_v4 }
  0xaa   :  { %328 = vrot.lane.b32.xlu1 %v2650_v50, %s2828_s27  ;;  %v2665_v47 = vpack.c.bf16 %v536_v42, %v535_v41  ;;  %v2699_v56 = vpack.c.bf16 %v927_v18, %v926_v17 }
  0xab   :  { %326 = vrot.lane.b32.xlu0 %v2649_v55, %s2828_s27 }
  0xae   :  { %746 = vrot.lane.b32.xlu1 %v2682_v57, %s2828_s27  ;;  %v1005_v57 = vld [vmem:[%s3710_s3] sm:$0xff] }
  0xaf   :  { %744 = vrot.lane.b32.xlu0 %v2681_v58, %s2828_s27  ;;  %v3170_v58 = vld [vmem:[#allocation3 + $0x48] sm:$0xff] }
  0xb0   :  { %v2731_v62 = vpack.c.bf16 %v3172_v60, %v3170_v58  ;;  %v1558_v9 = vmul.f32 %v2945_v32, %v3170_v58  ;;  %v1510_v27 = vmul.f32 %v2968_v46, %v3170_v58 }
  0xb2   :  { %750 = vrot.lane.b32.xlu1 %v2650_v50, %s2828_s27  ;;  %v2667_v50 = vpack.c.bf16 %v539_v49, %v538_v48  ;;  %v1445_v48 = vmul.f32 %v3170_v58, %v3012_v11 }
  0xb3   :  { %748 = vrot.lane.b32.xlu0 %v2649_v55, %s2828_s27  ;;  %v2488_v55 = vcombine.high %v3151_v54, %v3151_v54 }
  0xb5   :  { %2525 = vmatprep.mubr.msk.bf16.mxu0 %vm217_vm13, %v2488_v55  ;;  %2526 = vmatprep.mubr.msk.bf16.mxu1 %vm217_vm13, %v2488_v55 }
  0xb6   :  { %266 = vrot.lane.b32.xlu1 %v2644_v63, %s2826_s0  ;;  %v3176_v63 = vpop.permute.xlu1 %210 }
  0xb7   :  { %264 = vrot.lane.b32.xlu0 %v2643_v0, %s2826_s0  ;;  %v3178_v0 = vpop.permute.xlu0 %208 }
  0xba   :  { %270 = vrot.lane.b32.xlu1 %v2646_v6, %s2826_s0  ;;  %v3193_v12 = vpop.permute.xlu1 %650 }
  0xbb   :  { %268 = vrot.lane.b32.xlu0 %v2645_v10, %s2826_s0 }
  0xbe   :  { %698 = vrot.lane.b32.xlu1 %v2678_v13, %s2826_s0  ;;  %v3197_v13 = vpop.permute.xlu0 %648 }
  0xbf   :  { %696 = vrot.lane.b32.xlu0 %v2677_v43, %s2826_s0 }
  0xc2   :  { %702 = vrot.lane.b32.xlu1 %v2646_v6, %s2826_s0  ;;  %v2765_v6 = vpack.c.bf16 %v3184_v5, %v3182_v4 }
  0xc3   :  { %700 = vrot.lane.b32.xlu0 %v2645_v10, %s2826_s0  ;;  %v1559_v10 = vmul.f32 %v3172_v60, %v2949_v34 }
  0xc5   :  { %v2727_v43 = vpack.c.bf16 %v1559_v10, %v1558_v9 }
  0xc6   :  { %162 = vrot.lane.b32.xlu1 %v2636_v23, %s2831_s30  ;;  %v3207_v23 = vpop.permute.xlu1 %654 }
  0xc7   :  { %160 = vrot.lane.b32.xlu0 %v2635_v24, %s2831_s30  ;;  %v3209_v24 = vpop.permute.xlu0 %652 }
  0xca   :  { %166 = vrot.lane.b32.xlu1 %v2638_v28, %s2831_s30 }
  0xcb   :  { %164 = vrot.lane.b32.xlu0 %v2637_v33, %s2831_s30 }
  0xce   :  { %608 = vrot.lane.b32.xlu1 %v2670_v36, %s2831_s30  ;;  %v1901_v36 = vmul.f32 %v3184_v5, %v2979_v52 }
  0xcf   :  { %606 = vrot.lane.b32.xlu0 %v2669_v44, %s2831_s30 }
  0xd2   :  { %612 = vrot.lane.b32.xlu1 %v2638_v28, %s2831_s30  ;;  %v1511_v28 = vmul.f32 %v3172_v60, %v2979_v52 }
  0xd3   :  { %610 = vrot.lane.b32.xlu0 %v2637_v33, %s2831_s30 }
  0xd4   :  { %v2723_v33 = vpack.c.bf16 %v1511_v28, %v1510_v27 }
  0xd6   :  { %559 = vrot.lane.b32.xlu1 %v2666_v45, %s2830_s29 }
  0xd7   :  { %557 = vrot.lane.b32.xlu0 %v2665_v47, %s2830_s29  ;;  %v2757_v47 = vpack.c.bf16 %v1901_v36, %v1900_v35 }
  0xda   :  { %563 = vrot.lane.b32.xlu1 %v2666_v45, %s2830_s29 }
  0xdb   :  { %561 = vrot.lane.b32.xlu0 %v2667_v50, %s2830_s29 }
  0xde   :  { %950 = vrot.lane.b32.xlu1 %v2666_v45, %s2830_s29 }
  0xdf   :  { %948 = vrot.lane.b32.xlu0 %v2699_v56, %s2830_s29 }
  0xe2   :  { %954 = vrot.lane.b32.xlu1 %v2666_v45, %s2830_s29 }
  0xe3   :  { %952 = vrot.lane.b32.xlu0 %v2667_v50, %s2830_s29 }
  0xe6   :  { %1621 = vrot.lane.b32.xlu1 %v2832_v20, %s2833_s7 }
  0xe7   :  { %1008 = vperm.xlu0 %2819, %v1005_v57  }
  0xea   :  { %1625 = vrot.lane.b32.xlu1 %v2832_v20, %s2833_s7 }
  0xeb   :  { %1623 = vrot.lane.b32.xlu0 %v2731_v62, %s2833_s7  ;;  %v2717_v62 = vpack.c.bf16 %v1445_v48, %v3022_v25 }
  0xee   :  { %2011 = vrot.lane.b32.xlu1 %v2832_v20, %s2833_s7 }
  0xef   :  { %2013 = vrot.lane.b32.xlu0 %v2765_v6, %s2833_s7  ;;  %v1835_v6 = vmul.f32 %v3182_v4, %v3012_v11 }
  0xf1   :  { %v2751_v28 = vpack.c.bf16 %v1835_v6, %v3022_v25 }
  0xf2   :  { %2015 = vrot.lane.b32.xlu1 %v2832_v20, %s2833_s7 }
  0xf3   :  { %1581 = vrot.lane.b32.xlu0 %v2727_v43, %s2829_s28 }
  0xf6   :  { %1579 = vrot.lane.b32.xlu1 %v2957_v39, %s2829_s28 }
  0xf7   :  { %1971 = vrot.lane.b32.xlu0 %v2761_v26, %s2829_s28 }
  0xf8   :  { %v459_v31 = vpop.permute.xlu1 %458 }
  0xf9   :  { %v457_v20 = vpop.permute.xlu0 %456  ;;  %v465_v44 = vrot.slane %v459_v31, 4  ;;  %v1397_v31 = vmul.f32 %v3170_v58, %v3056_v38 }
  0xfa   :  { %v464_v40 = vrot.slane %v457_v20, 4  ;;  %1583 = vrot.lane.b32.xlu1 %v2957_v39, %s2829_s28 }
  0xfb   :  { %1533 = vrot.lane.b32.xlu0 %v2723_v33, %s2827_s1  ;;  %v2713_v25 = vpack.c.bf16 %v1397_v31, %v3064_v61 }
  0xfc   :  { %v463_v41 = vpop.permute.xlu1 %462  ;;  %v468_v49 = vsel %vm172_vm8, %v464_v40, %v465_v44 }
  0xfd   :  { %v467_v42 = vrot.slane %v463_v41, 4  ;;  %v461_v45 = vpop.permute.xlu0 %460  ;;  %v470_v55 = vsel %vm237_vm10, %v457_v20, %v468_v49  ;;  %v1787_v41 = vmul.f32 %v3182_v4, %v3056_v38 }
  0xfe   :  { %v466_v50 = vrot.slane %v461_v45, 4  ;;  %1969 = vrot.lane.b32.xlu1 %v2957_v39, %s2829_s28 }
  0xff   :  { %1923 = vrot.lane.b32.xlu0 %v2757_v47, %s2827_s1 }
 0x100   :  { %v471_v17 = vsel %vm172_vm8, %v466_v50, %v467_v42  ;;  %v861_v18 = vpop.permute.xlu1 %860 }
 0x101   :  { %v472_v56 = vsel %vm237_vm10, %v461_v45, %v471_v17  ;;  %v859_v57 = vpop.permute.xlu0 %858  ;;  %v867_v9 = vrot.slane %v861_v18, 4  ;;  %v2747_v18 = vpack.c.bf16 %v1787_v41, %v3064_v61 }
 0x102   :  { %v866_v10 = vrot.slane %v859_v57, 4  ;;  %1973 = vrot.lane.b32.xlu1 %v2957_v39, %s2829_s28  ;;  %v2514_v43 = vcombine.high %v470_v55, %v472_v56  ;;  %v2513_v15 = vcombine.low %v470_v55, %v472_v56 }
 0x103   :  { %1467 = vrot.lane.b32.xlu0 %v2717_v62, %s2828_s27  ;;  %v2709_v62 = vpack.c.bf16 %v3170_v58, %v2825_v1 }
 0x104   :  { %v865_v19 = vpop.permute.xlu1 %864  ;;  %1203 = vmatprep.subr.bf16.mxu0 %v2514_v43  ;;  %v870_v20 = vsel %vm172_vm8, %v866_v10, %v867_v9  ;;  %v1446_v10 = vmul.f32 %v2998_v2, %v3172_v60 }
 0x105   :  { %v869_v26 = vrot.slane %v865_v19, 4  ;;  %1204 = vmatpush1.bf16.msra.mxu0 %v2513_v15  ;;  %v863_v27 = vpop.permute.xlu0 %862  ;;  %v871_v36 = vsel %vm237_vm10, %v859_v57, %v870_v20  ;;  %v344_v57 = vld [vmem:[#allocation2 + $0x10] sm:$0xff]  ;;  %v343_v20 = vld [vmem:[#allocation2 + $0x8] sm:$0xff] }
 0x106   :  { %v868_v33 = vrot.slane %v863_v27, 4  ;;  %1531 = vrot.lane.b32.xlu1 %v2990_v59, %s2827_s1  ;;  %v2772_v19 = vpack.c.bf16 %v2825_v1, %v344_v57 }
 0x107   :  { %1857 = vrot.lane.b32.xlu0 %v2751_v28, %s2828_s27 }
 0x108   :  { %v872_v39 = vsel %vm172_vm8, %v868_v33, %v869_v26  ;;  %v401_v35 = vpop.permute.xlu1 %400  ;;  %v2743_v33 = vpack.c.bf16 %v3182_v4, %v2825_v1  ;;  %v765_v4 = vld [vmem:[#allocation2 + $0x30] sm:$0xff] }
 0x109   :  { %v873_v44 = vsel %vm237_vm10, %v863_v27, %v872_v39  ;;  %v399_v40 = vpop.permute.xlu0 %398  ;;  %v407_v42 = vrot.slane %v401_v35, 4  ;;  %v2718_v35 = vpack.c.bf16 %v1446_v10, %v1446_v10 }
 0x10a   :  { %v406_v45 = vrot.slane %v399_v40, 4  ;;  %1535 = vrot.lane.b32.xlu1 %v2990_v59, %s2827_s1  ;;  %v2516_v47 = vcombine.high %v871_v36, %v873_v44  ;;  %v2515_v48 = vcombine.low %v871_v36, %v873_v44  ;;  %v1836_v36 = vmul.f32 %v2998_v2, %v3184_v5 }
 0x10b   :  { %1419 = vrot.lane.b32.xlu0 %v2713_v25, %s2826_s0  ;;  %v2771_v25 = vpack.c.bf16 %v2825_v1, %v343_v20 }
 0x10c   :  { %v405_v49 = vpop.permute.xlu1 %404  ;;  %1244 = vmatprep.subr.bf16.mxu1 %v2516_v47  ;;  %v410_v55 = vsel %vm172_vm8, %v406_v45, %v407_v42 }
 0x10d   :  { %v409_v50 = vrot.slane %v405_v49, 4  ;;  %1245 = vmatpush1.bf16.msra.mxu1 %v2515_v48  ;;  %v403_v17 = vpop.permute.xlu0 %402  ;;  %v412_v61 = vsel %vm295_vm7, %v399_v40, %v410_v55  ;;  %v2752_v48 = vpack.c.bf16 %v1836_v36, %v1836_v36  ;;  %v1398_v49 = vmul.f32 %v3041_v51, %v3172_v60 }
 0x10e   :  { %v408_v56 = vrot.slane %v403_v17, 4  ;;  %1921 = vrot.lane.b32.xlu1 %v2990_v59, %s2827_s1  ;;  %v2774_v55 = vpack.c.bf16 %v2825_v1, %v765_v4  ;;  %v2710_v36 = vpack.c.bf16 %v3172_v60, %v3172_v60 }
 0x10f   :  { %1809 = vrot.lane.b32.xlu0 %v2747_v18, %s2826_s0 }
 0x110   :  { %v413_v6 = vsel %vm172_vm8, %v408_v56, %v409_v50  ;;  %v813_v9 = vpop.permute.xlu1 %812 }
 0x111   :  { %v414_v43 = vsel %vm295_vm7, %v403_v17, %v413_v6  ;;  %v811_v15 = vpop.permute.xlu0 %810  ;;  %v819_v26 = vrot.slane %v813_v9, 4  ;;  %v764_v9 = vld [vmem:[#allocation2 + $0x28] sm:$0xff] }
 0x112   :  { %v818_v27 = vrot.slane %v811_v15, 4  ;;  %1925 = vrot.lane.b32.xlu1 %v2990_v59, %s2827_s1  ;;  %v2510_v28 = vcombine.high %v412_v61, %v414_v43  ;;  %v2509_v31 = vcombine.low %v412_v61, %v414_v43  ;;  %v1307_v59 = vmul.f32 %v3170_v58, %v3091_v14 }
 0x113   :  { %1371 = vrot.lane.b32.xlu0 %v2709_v62, %s2834_s8  ;;  %v2714_v61 = vpack.c.bf16 %v1398_v49, %v1398_v49  ;;  %v1788_v43 = vmul.f32 %v3041_v51, %v3184_v5  ;;  %v212_v49 = vrot.slane %v3162_v22, 4 }
 0x114   :  { %v817_v39 = vpop.permute.xlu1 %816  ;;  %1205 = vmatprep.subr.bf16.mxu0 %v2510_v28  ;;  %v822_v41 = vsel %vm172_vm8, %v818_v27, %v819_v26  ;;  %v2705_v18 = vpack.c.bf16 %v1307_v59, %v3099_v16 }
 0x115   :  { %v821_v44 = vrot.slane %v817_v39, 4  ;;  %1206 = vmatpush1.bf16.msra.mxu0 %v2509_v31  ;;  %v815_v40 = vpop.permute.xlu0 %814  ;;  %v823_v58 = vsel %vm295_vm7, %v811_v15, %v822_v41  ;;  %v2748_v20 = vpack.c.bf16 %v1788_v43, %v1788_v43 }
 0x116   :  { %v820_v42 = vrot.slane %v815_v40, 4  ;;  %1469 = vrot.lane.b32.xlu1 %v2718_v35, %s2828_s27  ;;  %1207 = vmatprep.subr.bf16.mxu0 %v2772_v19  ;;  %v2773_v19 = vpack.c.bf16 %v2825_v1, %v764_v9 }
 0x117   :  { %1761 = vrot.lane.b32.xlu0 %v2743_v33, %s2834_s8 }
 0x118   :  { %v824_v45 = vsel %vm172_vm8, %v820_v42, %v821_v44  ;;  %v325_v47 = vpop.permute.xlu1 %324 }
 0x119   :  { %v825_v50 = vsel %vm295_vm7, %v815_v40, %v824_v45  ;;  %v323_v17 = vpop.permute.xlu0 %322  ;;  %1208 = vmatpush1.bf16.msra.mxu0 %v2771_v25  ;;  %v331_v56 = vrot.slane %v325_v47, 4  ;;  %v2744_v47 = vpack.c.bf16 %v3184_v5, %v3184_v5 }
 0x11a   :  { %v330_v57 = vrot.slane %v323_v17, 4  ;;  %1859 = vrot.lane.b32.xlu1 %v2752_v48, %s2828_s27  ;;  %v2512_v62 = vcombine.high %v823_v58, %v825_v50  ;;  %v2511_v6 = vcombine.low %v823_v58, %v825_v50  ;;  %v213_v48 = vrot.slane %v3159_v21, 4 }
 0x11b   :  { %1329 = vrot.lane.b32.xlu0 %v2705_v18, %s2831_s30  ;;  %v215_v18 = vrot.slane %v3176_v63, 4 }
 0x11c   :  { %v329_v10 = vpop.permute.xlu1 %328  ;;  %1246 = vmatprep.subr.bf16.mxu1 %v2512_v62  ;;  %v334_v26 = vsel %vm172_vm8, %v330_v57, %v331_v56 }
 0x11d   :  { %v333_v15 = vrot.slane %v329_v10, 4  ;;  %1247 = vmatpush1.bf16.msra.mxu1 %v2511_v6  ;;  %v327_v16 = vpop.permute.xlu0 %326  ;;  %v336_v33 = vsel %vm335_vm6, %v323_v17, %v334_v26  ;;  %v1308_v17 = vmul.f32 %v3076_v7, %v3172_v60 }
 0x11e   :  { %v332_v27 = vrot.slane %v327_v16, 4  ;;  %1421 = vrot.lane.b32.xlu1 %v2714_v61, %s2826_s0  ;;  %1248 = vmatprep.subr.bf16.mxu1 %v2774_v55  ;;  %v214_v55 = vrot.slane %v3178_v0, 4  ;;  %v216_v61 = vsel %vm172_vm8, %v212_v49, %v213_v48 }
 0x11f   :  { %v2706_v60 = vpack.c.bf16 %v1308_v17, %v1308_v17 }
 0x120   :  { %v337_v28 = vsel %vm172_vm8, %v332_v27, %v333_v15  ;;  %v747_v31 = vpop.permute.xlu1 %746  ;;  %v219_v63 = vsel %vm172_vm8, %v214_v55, %v215_v18  ;;  %v218_v27 = vsel %vm217_vm13, %v3162_v22, %v216_v61 }
 0x121   :  { %v338_v39 = vsel %vm335_vm6, %v327_v16, %v337_v28  ;;  %v745_v35 = vpop.permute.xlu0 %744  ;;  %1249 = vmatpush1.bf16.msra.mxu1 %v2773_v19  ;;  %v753_v40 = vrot.slane %v747_v31, 4  ;;  %v220_v28 = vsel %vm217_vm13, %v3178_v0, %v219_v63  ;;  %v657_v31 = vrot.slane %v3193_v12, 4 }
 0x122   :  { %v2501_v1 = vcombine.low %v336_v33, %v338_v39  ;;  %v2502_v44 = vcombine.high %v336_v33, %v338_v39  ;;  %v752_v59 = vrot.slane %v745_v35, 4  ;;  %1811 = vrot.lane.b32.xlu1 %v2748_v20, %s2826_s0  ;;  %v656_v20 = vrot.slane %v3197_v13, 4 }
 0x123   :  { %v2494_v12 = vcombine.high %v218_v27, %v220_v28  ;;  %v2493_v49 = vcombine.low %v218_v27, %v220_v28 }
 0x124   :  { %v751_v25 = vpop.permute.xlu1 %750  ;;  %1209 = vmatprep.subr.bf16.mxu0 %v2502_v44  ;;  %v756_v4 = vsel %vm172_vm8, %v752_v59, %v753_v40 }
 0x125   :  { %v755_v41 = vrot.slane %v751_v25, 4  ;;  %1210 = vmatpush1.bf16.msra.mxu0 %v2501_v1  ;;  %v749_v42 = vpop.permute.xlu0 %748  ;;  %v757_v56 = vsel %vm335_vm6, %v745_v35, %v756_v4  ;;  %v659_v35 = vrot.slane %v3207_v23, 4 }
 0x126   :  { %v754_v45 = vrot.slane %v749_v42, 4  ;;  %1373 = vrot.lane.b32.xlu1 %v2710_v36, %s2834_s8  ;;  %v658_v36 = vrot.slane %v3209_v24, 4 }
 0x128   :  { %v758_v58 = vsel %vm172_vm8, %v754_v45, %v755_v41  ;;  %v267_v50 = vpop.permute.xlu1 %266  ;;  %v660_v45 = vsel %vm172_vm8, %v656_v20, %v657_v31  ;;  %v662_v23 = vsel %vm172_vm8, %v658_v36, %v659_v35 }
 0x129   :  { %v759_v57 = vsel %vm335_vm6, %v749_v42, %v758_v58  ;;  %v265_v62 = vpop.permute.xlu0 %264  ;;  %v273_v21 = vrot.slane %v267_v50, 4  ;;  %v661_v17 = vsel %vm217_vm13, %v3197_v13, %v660_v45  ;;  %v663_v18 = vsel %vm217_vm13, %v3209_v24, %v662_v23 }
 0x12a   :  { %v2503_v6 = vcombine.low %v757_v56, %v759_v57  ;;  %v2504_v9 = vcombine.high %v757_v56, %v759_v57  ;;  %v272_v10 = vrot.slane %v265_v62, 4  ;;  %1763 = vrot.lane.b32.xlu1 %v2744_v47, %s2834_s8  ;;  %v2496_v61 = vcombine.high %v661_v17, %v663_v18 }
 0x12b   :  { %v2495_v24 = vcombine.low %v661_v17, %v663_v18 }
 0x12c   :  { %v271_v43 = vpop.permute.xlu1 %270  ;;  %1250 = vmatprep.subr.bf16.mxu1 %v2504_v9  ;;  %v276_v19 = vsel %vm172_vm8, %v272_v10, %v273_v21 }
 0x12d   :  { %v275_v15 = vrot.slane %v271_v43, 4  ;;  %1251 = vmatpush1.bf16.msra.mxu1 %v2503_v6  ;;  %v269_v16 = vpop.permute.xlu0 %268  ;;  %v278_v1 = vsel %vm277_vm5, %v265_v62, %v276_v19 }
 0x12e   :  { %v274_v26 = vrot.slane %v269_v16, 4  ;;  %1331 = vrot.lane.b32.xlu1 %v2706_v60, %s2831_s30 }
 0x130   :  { %v279_v33 = vsel %vm172_vm8, %v274_v26, %v275_v15  ;;  %v699_v39 = vpop.permute.xlu1 %698 }
 0x131   :  { %v280_v44 = vsel %vm277_vm5, %v269_v16, %v279_v33  ;;  %v697_v40 = vpop.permute.xlu0 %696  ;;  %v705_v25 = vrot.slane %v699_v39, 4 }
 0x132   :  { %v2497_v22 = vcombine.low %v278_v1, %v280_v44  ;;  %v2498_v59 = vcombine.high %v278_v1, %v280_v44  ;;  %v704_v0 = vrot.slane %v697_v40, 4 }
 0x134   :  { %v703_v41 = vpop.permute.xlu1 %702  ;;  %1211 = vmatprep.subr.bf16.mxu0 %v2498_v59  ;;  %v708_v47 = vsel %vm172_vm8, %v704_v0, %v705_v25 }
 0x135   :  { %v707_v42 = vrot.slane %v703_v41, 4  ;;  %1212 = vmatpush1.bf16.msra.mxu0 %v2497_v22  ;;  %v701_v4 = vpop.permute.xlu0 %700  ;;  %v709_v55 = vsel %vm277_vm5, %v697_v40, %v708_v47 }
 0x136   :  { %v706_v48 = vrot.slane %v701_v4, 4  ;;  %1213 = vmatprep.subr.bf16.mxu0 %v2494_v12 }
 0x138   :  { %v710_v58 = vsel %vm172_vm8, %v706_v48, %v707_v42  ;;  %v163_v50 = vpop.permute.xlu1 %162 }
 0x139   :  { %v711_v56 = vsel %vm277_vm5, %v701_v4, %v710_v58  ;;  %1214 = vmatpush1.bf16.msra.mxu0 %v2493_v49  ;;  %v161_v57 = vpop.permute.xlu0 %160  ;;  %v169_v9 = vrot.slane %v163_v50, 4 }
 0x13a   :  { %v2499_v62 = vcombine.low %v709_v55, %v711_v56  ;;  %v2500_v6 = vcombine.high %v709_v55, %v711_v56  ;;  %v168_v21 = vrot.slane %v161_v57, 4 }
 0x13c   :  { %1252 = vmatprep.subr.bf16.mxu1 %v2500_v6  ;;  %v167_v10 = vpop.permute.xlu1 %166  ;;  %v173_v13 = vsel %vm172_vm8, %v168_v21, %v169_v9  ;;  %v2487_v21 = vcombine.low %v3151_v54, %v3151_v54 }
 0x13d   :  { %v171_v43 = vrot.slane %v167_v10, 4  ;;  %1253 = vmatpush1.bf16.msra.mxu1 %v2499_v62  ;;  %v165_v60 = vpop.permute.xlu0 %164  ;;  %v175_v19 = vsel %vm174_vm12, %v161_v57, %v173_v13 }
 0x13e   :  { %v170_v63 = vrot.slane %v165_v60, 4  ;;  %1254 = vmatprep.subr.bf16.mxu1 %v2496_v61 }
 0x140   :  { %v176_v15 = vsel %vm172_vm8, %v170_v63, %v171_v43  ;;  %v609_v16 = vpop.permute.xlu1 %608 }
 0x141   :  { %v177_v26 = vsel %vm174_vm12, %v165_v60, %v176_v15  ;;  %1255 = vmatpush1.bf16.msra.mxu1 %v2495_v24  ;;  %v607_v27 = vpop.permute.xlu0 %606  ;;  %v615_v20 = vrot.slane %v609_v16, 4 }
 0x142   :  { %v2489_v28 = vcombine.low %v175_v19, %v177_v26  ;;  %v2490_v31 = vcombine.high %v175_v19, %v177_v26  ;;  %v614_v33 = vrot.slane %v607_v27, 4 }
 0x144   :  { %v613_v39 = vpop.permute.xlu1 %612  ;;  %1215 = vmatprep.subr.bf16.mxu0 %v2490_v31  ;;  %v618_v1 = vsel %vm172_vm8, %v614_v33, %v615_v20 }
 0x145   :  { %v617_v35 = vrot.slane %v613_v39, 4  ;;  %1216 = vmatpush1.bf16.msra.mxu0 %v2489_v28  ;;  %v611_v36 = vpop.permute.xlu0 %610  ;;  %v619_v59 = vsel %vm174_vm12, %v607_v27, %v618_v1 }
 0x146   :  { %v616_v44 = vrot.slane %v611_v36, 4 }
 0x148   :  { %v620_v40 = vsel %vm172_vm8, %v616_v44, %v617_v35  ;;  %v560_v22 = vpop.permute.xlu1 %559 }
 0x149   :  { %v621_v25 = vsel %vm174_vm12, %v611_v36, %v620_v40  ;;  %v558_v0 = vpop.permute.xlu0 %557  ;;  %v566_v42 = vrot.slane %v560_v22, 4 }
 0x14a   :  { %v2491_v41 = vcombine.low %v619_v59, %v621_v25  ;;  %v2492_v12 = vcombine.high %v619_v59, %v621_v25  ;;  %v565_v4 = vrot.slane %v558_v0, 4 }
 0x14c   :  { %v564_v45 = vpop.permute.xlu1 %563  ;;  %1256 = vmatprep.subr.bf16.mxu1 %v2492_v12  ;;  %v569_v48 = vsel %vm172_vm8, %v565_v4, %v566_v42 }
 0x14d   :  { %v568_v23 = vrot.slane %v564_v45, 4  ;;  %1257 = vmatpush1.bf16.msra.mxu1 %v2491_v41  ;;  %v562_v47 = vpop.permute.xlu0 %561  ;;  %v571_v17 = vsel %vm133_vm11, %v558_v0, %v569_v48 }
 0x14e   :  { %v567_v49 = vrot.slane %v562_v47, 4 }
 0x150   :  { %v572_v58 = vsel %vm172_vm8, %v567_v49, %v568_v23  ;;  %v951_v50 = vpop.permute.xlu1 %950 }
 0x151   :  { %v573_v18 = vsel %vm133_vm11, %v562_v47, %v572_v58  ;;  %v949_v55 = vpop.permute.xlu0 %948  ;;  %v957_v62 = vrot.slane %v951_v50, 4 }
 0x152   :  { %v2521_v56 = vcombine.low %v571_v17, %v573_v18  ;;  %v2522_v57 = vcombine.high %v571_v17, %v573_v18  ;;  %v956_v6 = vrot.slane %v949_v55, 4 }
 0x154   :  { %v955_v9 = vpop.permute.xlu1 %954  ;;  %1231 = vmatprep.subr.bf16.mxu0 %v2522_v57  ;;  %v960_v43 = vsel %vm172_vm8, %v956_v6, %v957_v62 }
 0x155   :  { %v959_v10 = vrot.slane %v955_v9, 4  ;;  %1232 = vmatpush2.bf16.msra.mxu0 %v2521_v56  ;;  %v953_v61 = vpop.permute.xlu0 %952  ;;  %v961_v24 = vsel %vm133_vm11, %v949_v55, %v960_v43 }
 0x156   :  { %v958_v60 = vrot.slane %v953_v61, 4 }
 0x158   :  { %v962_v13 = vsel %vm172_vm8, %v958_v60, %v959_v10  ;;  %v3357_v63 = vpop.permute.xlu1 %1621  ;;  %1234 = vmatmul.mubr.bf16.vlgmr.msra.gmra.mxu0 %v2487_v21 }
 0x159   :  { %v963_v15 = vsel %vm133_vm11, %v953_v61, %v962_v13 }
 0x15a   :  { %v2523_v16 = vcombine.low %v961_v24, %v963_v15  ;;  %v2524_v19 = vcombine.high %v961_v24, %v963_v15 }
 0x15c   :  { %v3361_v26 = vpop.permute.xlu1 %1625  ;;  %1272 = vmatprep.subr.bf16.mxu1 %v2524_v19 }
 0x15d   :  { %1273 = vmatpush2.bf16.msra.mxu1 %v2523_v16 }
 0x160   :  { %v3363_v54 = vpop.permute.xlu1 %2011  ;;  %1275 = vmatmul.mubr.bf16.vlgmr.msra.gmra.mxu1 %v2487_v21 }
 0x162   :  { %v3365_v27 = vpop.permute.xlu0 %1008 }
 0x164   :  { %v3367_v28 = vpop.permute.xlu1 %2015 }
 0x166   :  { %v3369_v31 = vpop.permute.xlu0 %1623 }
 0x168   :  { %v3371_v20 = vpop.permute.xlu1 %1579 }
 0x16a   :  { %v3373_v33 = vpop.permute.xlu0 %2013 }
 0x16c   :  { %v1584_v39 = vpop.permute.xlu1 %1583 }
 0x16d   :  { %v1588_v36 = vrot.slane %v1584_v39, 4 }
 0x16e   :  { %v1582_v35 = vpop.permute.xlu0 %1581 }
 0x16f   :  { %v1587_v1 = vrot.slane %v1582_v35, 4 }
 0x170   :  { %v3375_v44 = vpop.permute.xlu1 %1969 }
 0x171   :  { %v1591_v40 = vsel %vm172_vm8, %v1587_v1, %v1588_v36 }
 0x172   :  { %v3379_v22 = vsel %vm237_vm10, %v1582_v35, %v1591_v40  ;;  %v1972_v59 = vpop.permute.xlu0 %1971 }
 0x173   :  { %v1977_v0 = vrot.slane %v1972_v59, 4 }
 0x174   :  { %v1974_v25 = vpop.permute.xlu1 %1973 }
 0x175   :  { %v1978_v41 = vrot.slane %v1974_v25, 4 }
 0x176   :  { %v1534_v12 = vpop.permute.xlu0 %1533 }
 0x177   :  { %v1981_v42 = vsel %vm172_vm8, %v1977_v0, %v1978_v41  ;;  %v1539_v48 = vrot.slane %v1534_v12, 4 }
 0x178   :  { %v3382_v4 = vpop.permute.xlu1 %1531  ;;  %v3385_v45 = vsel %vm237_vm10, %v1972_v59, %v1981_v42 }
 0x17a   :  { %v1924_v23 = vpop.permute.xlu0 %1923 }
 0x17b   :  { %v1929_v57 = vrot.slane %v1924_v23, 4 }
 0x17c   :  { %v1536_v47 = vpop.permute.xlu1 %1535 }
 0x17d   :  { %v1540_v49 = vrot.slane %v1536_v47, 4 }
 0x17e   :  { %v1468_v58 = vpop.permute.xlu0 %1467 }
 0x17f   :  { %v1543_v50 = vsel %vm172_vm8, %v1539_v48, %v1540_v49  ;;  %v1473_v61 = vrot.slane %v1468_v58, 4 }
 0x180   :  { %v3388_v17 = vpop.permute.xlu1 %1921  ;;  %v3391_v18 = vsel %vm295_vm7, %v1534_v12, %v1543_v50 }
 0x182   :  { %v1858_v55 = vpop.permute.xlu0 %1857 }
 0x183   :  { %v1863_v16 = vrot.slane %v1858_v55, 4 }
 0x184   :  { %v1926_v56 = vpop.permute.xlu1 %1925 }
 0x185   :  { %v1930_v62 = vrot.slane %v1926_v56, 4 }
 0x186   :  { %v1420_v6 = vpop.permute.xlu0 %1419 }
 0x187   :  { %v1933_v9 = vsel %vm172_vm8, %v1929_v57, %v1930_v62  ;;  %v1425_v1 = vrot.slane %v1420_v6, 4 }
 0x188   :  { %v1470_v21 = vpop.permute.xlu1 %1469  ;;  %v3395_v10 = vsel %vm295_vm7, %v1924_v23, %v1933_v9 }
 0x189   :  { %v1474_v43 = vrot.slane %v1470_v21, 4 }
 0x18a   :  { %v1810_v13 = vpop.permute.xlu0 %1809 }
 0x18b   :  { %v1477_v60 = vsel %vm172_vm8, %v1473_v61, %v1474_v43  ;;  %v1815_v12 = vrot.slane %v1810_v13, 4 }
 0x18c   :  { %v1860_v24 = vpop.permute.xlu1 %1859  ;;  %v3399_v15 = vsel %vm335_vm6, %v1468_v58, %v1477_v60 }
 0x18d   :  { %v1864_v19 = vrot.slane %v1860_v24, 4 }
 0x18e   :  { %v3405_v59 = vpop.permute.xlu0 %1371 }
 0x18f   :  { %v1867_v39 = vsel %vm172_vm8, %v1863_v16, %v1864_v19  ;;  %v2824_v16 = vld [vmem:[#allocation2] sm:$0xff] }
 0x190   :  { %v1422_v35 = vpop.permute.xlu1 %1421  ;;  %v3403_v36 = vsel %vm335_vm6, %v1858_v55, %v1867_v39 }
 0x191   :  { %v1426_v40 = vrot.slane %v1422_v35, 4 }
 0x192   :  { %v3412_v47 = vpop.permute.xlu0 %1761 }
 0x193   :  { %v1429_v25 = vsel %vm172_vm8, %v1425_v1, %v1426_v40 }
 0x194   :  { %v1812_v0 = vpop.permute.xlu1 %1811  ;;  %v3409_v41 = vsel %vm277_vm5, %v1420_v6, %v1429_v25 }
 0x195   :  { %v1816_v42 = vrot.slane %v1812_v0, 4 }
 0x196   :  { %v1330_v50 = vpop.permute.xlu0 %1329 }
 0x197   :  { %v1819_v23 = vsel %vm172_vm8, %v1815_v12, %v1816_v42  ;;  %v1335_v56 = vrot.slane %v1330_v50, 4 }
 0x198   :  { %v3414_v48 = vpop.permute.xlu1 %1373  ;;  %v3417_v49 = vsel %vm277_vm5, %v1810_v13, %v1819_v23 }
 0x19c   :  { %v3419_v58 = vpop.permute.xlu1 %1763 }
 0x1a0   :  { %v1332_v55 = vpop.permute.xlu1 %1331 }
 0x1a1   :  { %v1336_v57 = vrot.slane %v1332_v55, 4 }
 0x1a3   :  { %v1339_v62 = vsel %vm172_vm8, %v1335_v56, %v1336_v57 }
 0x1a4   :  { %v3423_v6 = vsel %vm174_vm12, %v1330_v50, %v1339_v62  ;;  %v1698_v62 = vmul.f32 %v3076_v7, %v3184_v5 }
 0x218   :  { %v1235_v9 = vpop.f32.mrf.mxu0 }
 0x219   :  { %v1236_v21 = vadd.f32 %v1235_v9, %v3365_v27 }
 0x21a   :  { %v1237_v61 = vpop.f32.mrf.mxu0 }
 0x21b   :  { %v3426_v43 = vmax.f32 %v1236_v21, 0.0  ;;  %v1238_v60 = vadd.f32 %v1237_v61, %v3365_v27  ;;  %v2740_v21 = vpack.c.bf16 %v1698_v62, %v1698_v62  ;;  %v1441_v61 = vmul.f32 %v2824_v16, %v3000_v3 }
 0x21c   :  { %v1239_v13 = vpop.f32.mrf.mxu0  ;;  %v1393_v3 = vmul.f32 %v2824_v16, %v3044_v53 }
 0x21d   :  { %v3429_v24 = vmax.f32 %v1238_v60, 0.0  ;;  %v2707_v19 = vpack.c.bf16 %v3426_v43, %v2824_v16  ;;  %v1442_v9 = vmul.f32 %v3426_v43, %v3012_v11  ;;  %v1647_v60 = vmul.f32 %v2824_v16, %v3111_v29 }
 0x21e   :  { %v1240_v39 = vpop.f32.mrf.mxu0 }
 0x21f   :  { %v2729_v35 = vpack.c.bf16 %v3429_v24, %v3426_v43  ;;  %1367 = vrot.lane.b32.xlu0 %v2707_v19, %s2834_s8  ;;  %v2708_v42 = vpack.c.bf16 %v3429_v24, %v3429_v24  ;;  %v2715_v13 = vpack.c.bf16 %v1442_v9, %v1441_v61  ;;  %v2734_v19 = vpack.c.bf16 %v1647_v60, %v1647_v60 }
 0x220   :  { %v1276_v1 = vpop.f32.mrf.mxu1  ;;  %v1305_v60 = vmul.f32 %v3076_v7, %v3429_v24 }
 0x221   :  { %v1277_v40 = vadd.f32 %v1276_v1, %v3365_v27  ;;  %1619 = vrot.lane.b32.xlu1 %v2729_v35, %s2833_s7  ;;  %v1394_v35 = vmul.f32 %v3426_v43, %v3056_v38 }
 0x222   :  { %v1278_v25 = vpop.f32.mrf.mxu1 }
 0x223   :  { %v3437_v0 = vmax.f32 %v1277_v40, 0.0  ;;  %v1279_v12 = vadd.f32 %v1278_v25, %v3365_v27  ;;  %v2711_v29 = vpack.c.bf16 %v1394_v35, %v1393_v3  ;;  %v1304_v25 = vmul.f32 %v3426_v43, %v3091_v14 }
 0x224   :  { %v1280_v23 = vpop.f32.mrf.mxu1 }
 0x225   :  { %v3442_v50 = vmax.f32 %v1279_v12, 0.0  ;;  %1369 = vrot.lane.b32.xlu1 %v2708_v42, %s2834_s8  ;;  %v2741_v55 = vpack.c.bf16 %v3437_v0, %v2824_v16  ;;  %v1832_v5 = vmul.f32 %v3437_v0, %v3012_v11  ;;  %v1784_v1 = vmul.f32 %v3437_v0, %v3056_v38 }
 0x226   :  { %v1281_v56 = vpop.f32.mrf.mxu1  ;;  %v1443_v11 = vmul.f32 %v2998_v2, %v3429_v24  ;;  %v1303_v12 = vmul.f32 %v2824_v16, %v3079_v8  ;;  %v1556_v23 = vmul.f32 %v3429_v24, %v2949_v34  ;;  %v1945_v62 = vmul.f32 %v2945_v32, %v3437_v0 }
 0x227   :  { %1757 = vrot.lane.b32.xlu0 %v2741_v55, %s2834_s8  ;;  %v2742_v57 = vpack.c.bf16 %v3442_v50, %v3442_v50  ;;  %v2763_v27 = vpack.c.bf16 %v3442_v50, %v3437_v0  ;;  %v2749_v39 = vpack.c.bf16 %v1832_v5, %v1441_v61  ;;  %v2745_v40 = vpack.c.bf16 %v1784_v1, %v1393_v3 }
 0x228   :  { %v2716_v53 = vpack.c.bf16 %v1443_v11, %v1443_v11  ;;  %v1833_v42 = vmul.f32 %v2998_v2, %v3442_v50  ;;  %v2703_v38 = vpack.c.bf16 %v1304_v25, %v1303_v12  ;;  %v1555_v56 = vmul.f32 %v2945_v32, %v3426_v43  ;;  %v3522_v11 = vld [vmem:[#allocation3 + $0x48] sm:$0xff] }
 0x229   :  { %1759 = vrot.lane.b32.xlu1 %v2742_v57, %s2834_s8  ;;  %v1395_v57 = vmul.f32 %v3041_v51, %v3429_v24  ;;  %v1946_v2 = vmul.f32 %v3442_v50, %v2949_v34  ;;  %v1507_v34 = vmul.f32 %v2968_v46, %v3426_v43  ;;  %v1897_v5 = vmul.f32 %v2968_v46, %v3437_v0 }
 0x22a   :  { %v2750_v55 = vpack.c.bf16 %v1833_v42, %v1833_v42  ;;  %v2725_v8 = vpack.c.bf16 %v1556_v23, %v1555_v56  ;;  %v1694_v3 = vmul.f32 %v3437_v0, %v3091_v14  ;;  %v1648_v25 = vmul.f32 %v3114_v30, %v3522_v11  ;;  %v3548_v56 = vld.sshfl [vmem:[%s3711_s4] sm:$0x33 pattern:$0x76325410] }
 0x22b   :  { %2009 = vrot.lane.b32.xlu0 %v2763_v27, %s2833_s7  ;;  %v2712_v16 = vpack.c.bf16 %v1395_v57, %v1395_v57  ;;  %v1785_v27 = vmul.f32 %v3041_v51, %v3442_v50  ;;  %v2759_v9 = vpack.c.bf16 %v1946_v2, %v1945_v62  ;;  %v1898_v51 = vmul.f32 %v3442_v50, %v2979_v52 }
 0x22c   :  { %v2737_v1 = vpack.c.bf16 %v1694_v3, %v1303_v12  ;;  %v2128_v57 = vcombine.high %v3548_v56, %v3548_v56  ;;  %v2020_v3 = vrot.slane %v3367_v28, 4 }
 0x22d   :  { %1721 = vrot.lane.b32.xlu1 %v2740_v21, %s2831_s30  ;;  %v1508_v21 = vmul.f32 %v3429_v24, %v2979_v52  ;;  %v2746_v61 = vpack.c.bf16 %v1785_v27, %v1785_v27  ;;  %v2755_v35 = vpack.c.bf16 %v1898_v51, %v1897_v5  ;;  %v2114_v27 = vld [vmem:[%s3712_s5] sm:$0xf] }
 0x22e   :  { %2632 = vmatprep.mubr.msk.bf16.mxu0 %vm217_vm13, %v2128_v57  ;;  %2633 = vmatprep.mubr.msk.bf16.mxu1 %vm217_vm13, %v2128_v57 }
 0x22f   :  { %1463 = vrot.lane.b32.xlu0 %v2715_v13, %s2828_s27  ;;  %v2721_v32 = vpack.c.bf16 %v1508_v21, %v1507_v34  ;;  %v2704_v13 = vpack.c.bf16 %v1305_v60, %v1305_v60 }
 0x231   :  { %1669 = vrot.lane.b32.xlu1 %v2734_v19, %s2830_s29 }
 0x233   :  { %1853 = vrot.lane.b32.xlu0 %v2749_v39, %s2828_s27  ;;  %v1695_v39 = vmul.f32 %v3076_v7, %v3442_v50  ;;  %v3524_v7 = vld [vmem:[#allocation3 + $0x50] sm:$0xff] }
 0x235   :  { %1673 = vrot.lane.b32.xlu1 %v2734_v19, %s2830_s29  ;;  %v2738_v52 = vpack.c.bf16 %v1695_v39, %v1695_v39 }
 0x237   :  { %1415 = vrot.lane.b32.xlu0 %v2711_v29, %s2826_s0  ;;  %v3516_v29 = vld [vmem:[#allocation3 + $0x68] sm:$0xff] }
 0x238   :  { %v1697_v46 = vmul.f32 %v3516_v29, %v3091_v14  ;;  %v1646_v14 = vmul.f32 %v3429_v24, %v3126_v37  ;;  %v2038_v2 = vmul.f32 %v3114_v30, %v3516_v29 }
 0x239   :  { %2059 = vrot.lane.b32.xlu1 %v2734_v19, %s2830_s29 }
 0x23b   :  { %1805 = vrot.lane.b32.xlu0 %v2745_v40, %s2826_s0  ;;  %v2739_v40 = vpack.c.bf16 %v1697_v46, %v1303_v12  ;;  %v3540_v12 = vld [vmem:[#allocation3 + $0x70] sm:$0xff]  ;;  %v2018_v46 = vrot.slane %v3363_v54, 4 }
 0x23d   :  { %1465 = vrot.lane.b32.xlu1 %v2716_v53, %s2828_s27  ;;  %v1649_v53 = vmul.f32 %v3524_v7, %v3126_v37 }
 0x23f   :  { %1325 = vrot.lane.b32.xlu0 %v2703_v38, %s2831_s30  ;;  %v2735_v42 = vpack.c.bf16 %v1649_v53, %v1648_v25  ;;  %v1645_v38 = vmul.f32 %v3114_v30, %v3426_v43 }
 0x241   :  { %1855 = vrot.lane.b32.xlu1 %v2750_v55, %s2828_s27  ;;  %v2733_v23 = vpack.c.bf16 %v1646_v14, %v1645_v38  ;;  %v2035_v55 = vmul.f32 %v3114_v30, %v3437_v0  ;;  %v1629_v30 = vrot.slane %v3369_v31, 4 }
 0x243   :  { %1577 = vrot.lane.b32.xlu0 %v2725_v8, %s2829_s28 }
 0x245   :  { %1417 = vrot.lane.b32.xlu1 %v2712_v16, %s2826_s0  ;;  %v2039_v16 = vmul.f32 %v3540_v12, %v3126_v37 }
 0x247   :  { %1967 = vrot.lane.b32.xlu0 %v2759_v9, %s2829_s28  ;;  %v2769_v62 = vpack.c.bf16 %v2039_v16, %v2038_v2  ;;  %v1630_v9 = vrot.slane %v3361_v26, 4 }
 0x249   :  { %1807 = vrot.lane.b32.xlu1 %v2746_v61, %s2826_s0  ;;  %v1628_v61 = vrot.slane %v3357_v63, 4  ;;  %v1633_v34 = vsel %vm172_vm8, %v1629_v30, %v1630_v9  ;;  %v2019_v63 = vrot.slane %v3373_v33, 4  ;;  %v1586_v9 = vrot.slane %v3371_v20, 4 }
 0x24a   :  { %v1634_v51 = vsel %vm512_vm9, %v3369_v31, %v1633_v34 }
 0x24b   :  { %1529 = vrot.lane.b32.xlu0 %v2721_v32, %s2827_s1  ;;  %v2023_v31 = vsel %vm172_vm8, %v2019_v63, %v2020_v3 }
 0x24d   :  { %1327 = vrot.lane.b32.xlu1 %v2704_v13, %s2831_s30 }
 0x24f   :  { %1919 = vrot.lane.b32.xlu0 %v2755_v35, %s2827_s1 }
 0x251   :  { %1717 = vrot.lane.b32.xlu1 %v2738_v52, %s2831_s30 }
 0x253   :  { %1715 = vrot.lane.b32.xlu0 %v2737_v1, %s2831_s30 }
 0x255   :  { %2063 = vrot.lane.b32.xlu1 %v2734_v19, %s2830_s29  ;;  %v2036_v19 = vmul.f32 %v3442_v50, %v3126_v37 }
 0x257   :  { %1719 = vrot.lane.b32.xlu0 %v2739_v40, %s2831_s30  ;;  %v2767_v8 = vpack.c.bf16 %v2036_v19, %v2035_v55 }
 0x25b   :  { %1671 = vrot.lane.b32.xlu0 %v2735_v42, %s2830_s29  ;;  %v2024_v42 = vsel %vm512_vm9, %v3373_v33, %v2023_v31 }
 0x25f   :  { %1667 = vrot.lane.b32.xlu0 %v2733_v23, %s2830_s29 }
 0x263   :  { %2057 = vrot.lane.b32.xlu0 %v2767_v8, %s2830_s29 }
 0x267   :  { %2061 = vrot.lane.b32.xlu0 %v2769_v62, %s2830_s29 }
 0x26b   :  { %2117 = vperm.xlu0 %2819, %v2114_v27  }
 0x291   :  { %v3565_v37 = vpop.permute.xlu0 %1367 }
 0x293   :  { %v1620_v21 = vpop.permute.xlu1 %1619 }
 0x294   :  { %v1627_v60 = vrot.slane %v1620_v21, 4 }
 0x296   :  { %v1631_v32 = vsel %vm172_vm8, %v1627_v60, %v1628_v61  ;;  %v1976_v60 = vrot.slane %v3375_v44, 4 }
 0x297   :  { %v1632_v13 = vsel %vm512_vm9, %v1620_v21, %v1631_v32  ;;  %v3573_v5 = vpop.permute.xlu1 %1369 }
 0x298   :  { %v2624_v26 = vcombine.low %v1632_v13, %v1634_v51  ;;  %v2625_v39 = vcombine.high %v1632_v13, %v1634_v51 }
 0x299   :  { %v3575_v35 = vpop.permute.xlu0 %1757 }
 0x29a   :  { %2313 = vmatprep.subr.bf16.mxu0 %v2625_v39 }
 0x29b   :  { %v3579_v52 = vpop.permute.xlu1 %1759  ;;  %2314 = vmatpush1.bf16.msra.mxu0 %v2624_v26 }
 0x29d   :  { %v2010_v1 = vpop.permute.xlu0 %2009 }
 0x29e   :  { %v2017_v40 = vrot.slane %v2010_v1, 4 }
 0x29f   :  { %v3583_v25 = vpop.permute.xlu1 %1721 }
 0x2a0   :  { %v2021_v53 = vsel %vm172_vm8, %v2017_v40, %v2018_v46 }
 0x2a1   :  { %v2022_v28 = vsel %vm512_vm9, %v2010_v1, %v2021_v53  ;;  %v1464_v14 = vpop.permute.xlu0 %1463  ;;  %v1538_v1 = vrot.slane %v3382_v4, 4  ;;  %v1928_v53 = vrot.slane %v3388_v17, 4 }
 0x2a2   :  { %v2626_v38 = vcombine.low %v2022_v28, %v2024_v42  ;;  %v2627_v23 = vcombine.high %v2022_v28, %v2024_v42  ;;  %v1471_v40 = vrot.slane %v1464_v14, 4 }
 0x2a3   :  { %v3589_v19 = vpop.permute.xlu1 %1669 }
 0x2a4   :  { %2354 = vmatprep.subr.bf16.mxu1 %v2627_v23 }
 0x2a5   :  { %2355 = vmatpush1.bf16.msra.mxu1 %v2626_v38  ;;  %v3591_v54 = vpop.permute.xlu0 %1853 }
 0x2a7   :  { %v3593_v55 = vpop.permute.xlu1 %1673 }
 0x2a9   :  { %v3595_v57 = vpop.permute.xlu0 %1415 }
 0x2aa   :  { %v1423_v17 = vrot.slane %v3595_v57, 4 }
 0x2ab   :  { %v3597_v8 = vpop.permute.xlu1 %2059 }
 0x2ad   :  { %v3599_v2 = vpop.permute.xlu0 %1805 }
 0x2af   :  { %v1466_v33 = vpop.permute.xlu1 %1465 }
 0x2b0   :  { %v1472_v3 = vrot.slane %v1466_v33, 4 }
 0x2b1   :  { %v3601_v16 = vpop.permute.xlu0 %1325 }
 0x2b2   :  { %v1475_v42 = vsel %vm172_vm8, %v1471_v40, %v1472_v3 }
 0x2b3   :  { %v1856_v62 = vpop.permute.xlu1 %1855 }
 0x2b4   :  { %v1862_v28 = vrot.slane %v1856_v62, 4  ;;  %v2776_v62 = vpack.c.bf16 %v3524_v7, %v3429_v24  ;;  %v1377_v24 = vrot.slane %v3405_v59, 4  ;;  %v1378_v7 = vrot.slane %v3414_v48, 4 }
 0x2b5   :  { %v1578_v27 = vpop.permute.xlu0 %1577 }
 0x2b6   :  { %v1585_v30 = vrot.slane %v1578_v27, 4  ;;  %v1381_v40 = vsel %vm172_vm8, %v1377_v24, %v1378_v7 }
 0x2b7   :  { %v1418_v26 = vpop.permute.xlu1 %1417 }
 0x2b8   :  { %v1589_v21 = vsel %vm172_vm8, %v1585_v30, %v1586_v9  ;;  %v1424_v4 = vrot.slane %v1418_v26, 4  ;;  %v1861_v30 = vrot.slane %v3591_v54, 4 }
 0x2b9   :  { %v1590_v61 = vsel %vm237_vm10, %v1578_v27, %v1589_v21  ;;  %v1968_v34 = vpop.permute.xlu0 %1967  ;;  %v1376_v21 = vrot.slane %v3573_v5, 4 }
 0x2ba   :  { %v2620_v32 = vcombine.low %v1590_v61, %v3379_v22  ;;  %v2621_v51 = vcombine.high %v1590_v61, %v3379_v22  ;;  %v1975_v13 = vrot.slane %v1968_v34, 4  ;;  %v1427_v5 = vsel %vm172_vm8, %v1423_v17, %v1424_v4 }
 0x2bb   :  { %v1808_v38 = vpop.permute.xlu1 %1807 }
 0x2bc   :  { %v1979_v39 = vsel %vm172_vm8, %v1975_v13, %v1976_v60  ;;  %2315 = vmatprep.subr.bf16.mxu0 %v2621_v51  ;;  %v1865_v60 = vsel %vm172_vm8, %v1861_v30, %v1862_v28  ;;  %v1476_v51 = vsel %vm335_vm6, %v1464_v14, %v1475_v42  ;;  %v1814_v13 = vrot.slane %v1808_v38, 4 }
 0x2bd   :  { %v1980_v20 = vsel %vm237_vm10, %v1968_v34, %v1979_v39  ;;  %2316 = vmatpush1.bf16.msra.mxu0 %v2620_v32  ;;  %v1530_v63 = vpop.permute.xlu0 %1529  ;;  %v1375_v34 = vrot.slane %v3565_v37, 4 }
 0x2be   :  { %v2622_v46 = vcombine.low %v1980_v20, %v3385_v45  ;;  %v2623_v44 = vcombine.high %v1980_v20, %v3385_v45  ;;  %v1537_v31 = vrot.slane %v1530_v63, 4  ;;  %v2775_v20 = vpack.c.bf16 %v3522_v11, %v3426_v43 }
 0x2bf   :  { %v1328_v3 = vpop.permute.xlu1 %1327  ;;  %v1379_v14 = vsel %vm172_vm8, %v1375_v34, %v1376_v21  ;;  %v1428_v43 = vsel %vm277_vm5, %v3595_v57, %v1427_v5  ;;  %v1768_v11 = vrot.slane %v3419_v58, 4  ;;  %v1333_v58 = vrot.slane %v3601_v16, 4 }
 0x2c0   :  { %v1541_v22 = vsel %vm172_vm8, %v1537_v31, %v1538_v1  ;;  %2356 = vmatprep.subr.bf16.mxu1 %v2623_v44  ;;  %v1766_v1 = vrot.slane %v3579_v52, 4  ;;  %v1767_v44 = vrot.slane %v3412_v47, 4  ;;  %v1334_v31 = vrot.slane %v1328_v3, 4 }
 0x2c1   :  { %v1542_v23 = vsel %vm295_vm7, %v1530_v63, %v1541_v22  ;;  %2357 = vmatpush1.bf16.msra.mxu1 %v2622_v46  ;;  %v1920_v33 = vpop.permute.xlu0 %1919  ;;  %v2778_v63 = vpack.c.bf16 %v3540_v12, %v3442_v50  ;;  %v1813_v46 = vrot.slane %v3599_v2, 4  ;;  %v1866_v50 = vsel %vm335_vm6, %v3591_v54, %v1865_v60 }
 0x2c2   :  { %v2616_v27 = vcombine.low %v1542_v23, %v3391_v18  ;;  %v2617_v45 = vcombine.high %v1542_v23, %v3391_v18  ;;  %v1927_v9 = vrot.slane %v1920_v33, 4  ;;  %v1765_v12 = vrot.slane %v3575_v35, 4 }
 0x2c3   :  { %v1817_v52 = vsel %vm172_vm8, %v1813_v46, %v1814_v13  ;;  %v2608_v22 = vcombine.low %v1476_v51, %v3399_v15  ;;  %v1380_v57 = vsel %vm217_vm13, %v3565_v37, %v1379_v14  ;;  %v2605_v42 = vcombine.high %v1428_v43, %v3409_v41 }
 0x2c4   :  { %v1931_v61 = vsel %vm172_vm8, %v1927_v9, %v1928_v53  ;;  %2317 = vmatprep.subr.bf16.mxu0 %v2617_v45  ;;  %v2777_v53 = vpack.c.bf16 %v3516_v29, %v3437_v0  ;;  %v1769_v54 = vsel %vm172_vm8, %v1765_v12, %v1766_v1  ;;  %v2611_v28 = vcombine.high %v1866_v50, %v3403_v36 }
 0x2c5   :  { %v1932_v32 = vsel %vm295_vm7, %v1920_v33, %v1931_v61  ;;  %2318 = vmatpush1.bf16.msra.mxu0 %v2616_v27  ;;  %v3629_v18 = vpop.permute.xlu0 %1715  ;;  %v1771_v23 = vsel %vm172_vm8, %v1767_v44, %v1768_v11  ;;  %v1337_v0 = vsel %vm172_vm8, %v1333_v58, %v1334_v31  ;;  %v1382_v37 = vsel %vm217_vm13, %v3405_v59, %v1381_v40  ;;  %v1718_v33 = vpop.permute.xlu1 %1717 }
 0x2c6   :  { %v2618_v26 = vcombine.low %v1932_v32, %v3395_v10  ;;  %v2619_v39 = vcombine.high %v1932_v32, %v3395_v10  ;;  %2319 = vmatprep.subr.bf16.mxu0 %v2776_v62  ;;  %v2609_v10 = vcombine.high %v1476_v51, %v3399_v15  ;;  %v1818_v15 = vsel %vm277_vm5, %v3599_v2, %v1817_v52 }
 0x2c7   :  { %v2604_v4 = vcombine.low %v1428_v43, %v3409_v41  ;;  %v2610_v27 = vcombine.low %v1866_v50, %v3403_v36  ;;  %v2601_v45 = vcombine.high %v1380_v57, %v1382_v37  ;;  %v1770_v9 = vsel %vm217_vm13, %v3575_v35, %v1769_v54 }
 0x2c8   :  { %2358 = vmatprep.subr.bf16.mxu1 %v2619_v39  ;;  %v1726_v2 = vrot.slane %v3583_v25, 4  ;;  %v1723_v30 = vrot.slane %v3629_v18, 4  ;;  %v2607_v17 = vcombine.high %v1818_v15, %v3417_v49  ;;  %v1676_v61 = vrot.slane %v3589_v19, 4 }
 0x2c9   :  { %2320 = vmatpush1.bf16.msra.mxu0 %v2775_v20  ;;  %2359 = vmatpush1.bf16.msra.mxu1 %v2618_v26  ;;  %v1720_v48 = vpop.permute.xlu0 %1719  ;;  %v1338_v41 = vsel %vm174_vm12, %v3601_v16, %v1337_v0  ;;  %v1772_v36 = vsel %vm217_vm13, %v3412_v47, %v1771_v23  ;;  %v1678_v35 = vrot.slane %v3593_v55, 4  ;;  %v1724_v62 = vrot.slane %v1718_v33, 4  ;;  %v2064_v24 = vpop.permute.xlu1 %2063 }
 0x2ca   :  { %2321 = vmatprep.subr.bf16.mxu0 %v2609_v10  ;;  %2360 = vmatprep.subr.bf16.mxu1 %v2778_v63  ;;  %v1725_v29 = vrot.slane %v1720_v48, 4  ;;  %v2600_v60 = vcombine.low %v1380_v57, %v1382_v37  ;;  %v2606_v19 = vcombine.low %v1818_v15, %v3417_v49  ;;  %v2603_v32 = vcombine.high %v1770_v9, %v1772_v36 }
 0x2cb   :  { %v1727_v51 = vsel %vm172_vm8, %v1723_v30, %v1724_v62  ;;  %v2597_v47 = vcombine.high %v1338_v41, %v3423_v6  ;;  %v2596_v3 = vcombine.low %v1338_v41, %v3423_v6  ;;  %v2602_v20 = vcombine.low %v1770_v9, %v1772_v36 }
 0x2cc   :  { %v1729_v25 = vsel %vm172_vm8, %v1725_v29, %v1726_v2  ;;  %v1728_v49 = vsel %vm174_vm12, %v3629_v18, %v1727_v51  ;;  %v2066_v63 = vrot.slane %v3597_v8, 4  ;;  %v2068_v10 = vrot.slane %v2064_v24, 4 }
 0x2cd   :  { %2322 = vmatpush1.bf16.msra.mxu0 %v2608_v22  ;;  %2361 = vmatpush1.bf16.msra.mxu1 %v2777_v53  ;;  %v1672_v38 = vpop.permute.xlu0 %1671  ;;  %v1730_v55 = vsel %vm174_vm12, %v1720_v48, %v1729_v25 }
 0x2ce   :  { %2323 = vmatprep.subr.bf16.mxu0 %v2605_v42  ;;  %2362 = vmatprep.subr.bf16.mxu1 %v2611_v28  ;;  %v1677_v21 = vrot.slane %v1672_v38, 4  ;;  %v2599_v14 = vcombine.high %v1728_v49, %v1730_v55  ;;  %v2598_v18 = vcombine.low %v1728_v49, %v1730_v55 }
 0x2d0   :  { %v1681_v5 = vsel %vm172_vm8, %v1677_v21, %v1678_v35 }
 0x2d1   :  { %2324 = vmatpush1.bf16.msra.mxu0 %v2604_v4  ;;  %2363 = vmatpush1.bf16.msra.mxu1 %v2610_v27  ;;  %v1668_v59 = vpop.permute.xlu0 %1667  ;;  %v1682_v7 = vsel %vm133_vm11, %v1672_v38, %v1681_v5 }
 0x2d2   :  { %v1675_v34 = vrot.slane %v1668_v59, 4  ;;  %2325 = vmatprep.subr.bf16.mxu0 %v2601_v45  ;;  %2364 = vmatprep.subr.bf16.mxu1 %v2607_v17 }
 0x2d4   :  { %v1679_v16 = vsel %vm172_vm8, %v1675_v34, %v1676_v61 }
 0x2d5   :  { %v1680_v13 = vsel %vm133_vm11, %v1668_v59, %v1679_v16  ;;  %2326 = vmatpush1.bf16.msra.mxu0 %v2600_v60  ;;  %2365 = vmatpush1.bf16.msra.mxu1 %v2606_v19  ;;  %v2058_v26 = vpop.permute.xlu0 %2057 }
 0x2d6   :  { %v2065_v39 = vrot.slane %v2058_v26, 4  ;;  %2327 = vmatprep.subr.bf16.mxu0 %v2597_v47  ;;  %2366 = vmatprep.subr.bf16.mxu1 %v2603_v32  ;;  %v2629_v1 = vcombine.high %v1680_v13, %v1682_v7  ;;  %v2628_v43 = vcombine.low %v1680_v13, %v1682_v7 }
 0x2d8   :  { %v2069_v44 = vsel %vm172_vm8, %v2065_v39, %v2066_v63 }
 0x2d9   :  { %2328 = vmatpush1.bf16.msra.mxu0 %v2596_v3  ;;  %2367 = vmatpush1.bf16.msra.mxu1 %v2602_v20  ;;  %v2062_v46 = vpop.permute.xlu0 %2061  ;;  %v2070_v6 = vsel %vm133_vm11, %v2058_v26, %v2069_v44 }
 0x2da   :  { %v2067_v48 = vrot.slane %v2062_v46, 4  ;;  %2343 = vmatprep.subr.bf16.mxu0 %v2629_v1  ;;  %2368 = vmatprep.subr.bf16.mxu1 %v2599_v14 }
 0x2dc   :  { %v2071_v50 = vsel %vm172_vm8, %v2067_v48, %v2068_v10 }
 0x2dd   :  { %v2072_v11 = vsel %vm133_vm11, %v2062_v46, %v2071_v50  ;;  %2344 = vmatpush2.bf16.msra.mxu0 %v2628_v43  ;;  %2369 = vmatpush1.bf16.msra.mxu1 %v2598_v18 }
 0x2de   :  { %v2630_v8 = vcombine.low %v2070_v6, %v2072_v11  ;;  %v2631_v12 = vcombine.high %v2070_v6, %v2072_v11 }
 0x2e0   :  { %2346 = vmatmul.mubr.bf16.vlgmr.msra.gmra.mxu0 %v3548_v56  ;;  %2384 = vmatprep.subr.bf16.mxu1 %v2631_v12 }
 0x2e1   :  { %2385 = vmatpush2.bf16.msra.mxu1 %v2630_v8 }
 0x2e4   :  { %2387 = vmatmul.mubr.bf16.vlgmr.msra.gmra.mxu1 %v3548_v56 }
 0x2e6   :  { %v2118_v52 = vpop.permute.xlu0 %2117 }
 0x3a0   :  { %v2347_v31 = vpop.f32.mrf.mxu0 }
 0x3a1   :  { %v2348_v40 = vadd.f32 %v2347_v31, %v2118_v52 }
 0x3a2   :  { %v2349_v22 = vpop.f32.mrf.mxu0 }
 0x3a3   :  { %v2350_v53 = vadd.f32 %v2349_v22, %v2118_v52  ;;  %v2395_v58 = vmax.f32 %v2348_v40, 0.0 }
 0x3a4   :  { %v2351_v57 = vpop.f32.mrf.mxu0  ;;  %v2388_v54 = vpop.f32.mrf.mxu1 }
 0x3a5   :  { %v2396_v42 = vmax.f32 %v2350_v53, 0.0  ;;  %v2389_v28 = vadd.f32 %v2388_v54, %v2118_v52 }
 0x3a6   :  { %v2352_v38 = vpop.f32.mrf.mxu0  ;;  %v2390_v15 = vpop.f32.mrf.mxu1 }
 0x3a7   :  { %v2401_v23 = vcombine.low %v2395_v58, %v2396_v42  ;;  %v2391_v0 = vadd.f32 %v2390_v15, %v2118_v52  ;;  %v2397_v56 = vmax.f32 %v2389_v28, 0.0 }
 0x3a8   :  { %v2392_v29 = vpop.f32.mrf.mxu1 }
 0x3a9   :  { %2403 = vst [vmem:[%s3713_s6] sm:$0xff] %v2401_v23  ;;  %v2398_v37 = vmax.f32 %v2391_v0, 0.0 }
 0x3aa   :  { %v2393_v33 = vpop.f32.mrf.mxu1 }
 0x3ab   :  { %v2406_v4 = vcombine.low %v2397_v56, %v2398_v37 }
 0x3ad   :  { %2634 = vst [vmem:[%s3713_s6 + $0x8] sm:$0xff] %v2406_v4 }

</bundles_post_ra>
